<compile_context>
chip_gen: v7x
topology: tpu7x:2x2x1
jax: 0.10.0
libtpu: 0.0.40
codegen_flags: <defaults>
</compile_context>

<pallas_src>
import functools

import jax
import jax.numpy as jnp
from jax import lax
from jax.experimental import pallas as pl
from jax.experimental.pallas import tpu as pltpu

BN_EPS = 1e-4
LANE = 128      # channel padding granularity (TPU lane width)
SUBLANE = 16    # spatial padding granularity (bf16 sublane packing)


def _round_up(v, m):
    return (v + m - 1) // m * m


@functools.lru_cache(maxsize=None)
def _vmem_limit_bytes():
    """Scoped-VMEM limit derived from the chip's physical VMEM capacity."""
    try:
        cap = int(pltpu.get_tpu_info().vmem_capacity_bytes)
    except Exception:
        cap = 64 * 1024 * 1024          # assume the smallest (v7x per-core VMEM)
    # ~75% of physical: 48 MiB on v7x (64 MiB), 96 MiB on v5e/v6e (128 MiB).
    return max(32 * 1024 * 1024, min(cap * 3 // 4, 96 * 1024 * 1024))


def _layer_vmem_bytes(tile_h, wp, cin_p, cout_p, fold_dx, single_buf_w):
    """Rough per-layer VMEM footprint estimate for a given row-tile height."""
    in_t = tile_h * wp * cin_p * 2
    halo = wp * cin_p * 2
    out_t = tile_h * wp * cout_p * 2
    w_b = (1 if single_buf_w else 2) * (9 * cin_p * cout_p * 2 + cout_p * 4)
    buf = (tile_h + 2) * wp * cin_p * 2           # top|main|bot buffer
    shift = 2 * buf                               # left / right dx shifts
    big = 3 * buf if fold_dx else 0               # lane-folded K = 3*Cin operand
    acc = 2 * tile_h * wp * cout_p * 4            # f32 accumulator + mm result
    return 2 * (in_t + 2 * halo + out_t) + w_b + buf + shift + big + acc


def _choose_tile_h(batch, hp, wp, cin_p, cout_p, fold_dx, vmem_limit,
                   max_tile_h, single_buf_w):
    """Largest row-tile that fits the VMEM budget; keeps >=2 (even) grid steps."""
    cap = max(1, min(max_tile_h or 128, 128, hp))
    cands = sorted(d for d in range(8, hp + 1, 8) if hp % d == 0 and d <= cap)
    if not cands:
        cands = [d for d in range(1, hp + 1) if hp % d == 0 and d <= cap][-1:]
    budget = int(0.8 * vmem_limit)
    fits = [c for c in cands
            if _layer_vmem_bytes(c, wp, cin_p, cout_p, fold_dx,
                                 single_buf_w) <= budget] or cands[:1]
    # Keep both v7x TensorCores busy: prefer an even total step count >= 2.
    good = [c for c in fits
            if batch * (hp // c) >= 2 and (batch * (hp // c)) % 2 == 0]
    pool = good or [c for c in fits if batch * (hp // c) >= 2] or fits
    return pool[-1]


# ----------------------------------------------------------------------------
# Pallas kernel: fused 3x3 conv + folded-BN + ReLU for one (image, row-tile).
# ----------------------------------------------------------------------------
def _conv3x3_bn_relu_kernel(x_ref, top_ref, bot_ref, w_ref, bias_ref, o_ref,
                            *, w_valid, h_valid, fold_dx):
    # x_ref:    (1, TH, Wp, Cin)   bf16  current row-tile
    # top_ref:  (1, 1,  Wp, Cin)   bf16  row above the tile (zeroed at t==0)
    # bot_ref:  (1, 1,  Wp, Cin)   bf16  row below the tile (zeroed at t==T-1)
    # w_ref:    (3, 3*Cin, Cout)   bf16  dy-major, dx folded into K   (fold_dx)
    #        or (3, 3, Cin, Cout)  bf16  per-tap weights              (!fold_dx)
    #           BN scale is already folded into the weights.
    # bias_ref: (1, Cout)          f32   folded BN bias
    # o_ref:    (1, TH, Wp, Cout)  bf16
    t = pl.program_id(1)
    nt = pl.num_programs(1)
    _, TH, W, Cin = x_ref.shape
    Cout = o_ref.shape[-1]
    M = TH * W

    main = x_ref[0]                                         # (TH, W, Cin)
    # Conv zero-padding at the image top/bottom: bf16 select (no f32 round-trip).
    top = jnp.where(t > 0, top_ref[0], jnp.zeros_like(top_ref[0]))
    bot = jnp.where(t < nt - 1, bot_ref[0], jnp.zeros_like(bot_ref[0]))
    buf = jnp.concatenate([top, main, bot], axis=0)         # (TH+2, W, Cin)

    # dx = -1 / +1 taps: shift along W with an explicit zero boundary column.
    zcol = jnp.zeros((TH + 2, 1, Cin), buf.dtype)
    left = jnp.concatenate([zcol, buf[:, :W - 1, :]], axis=1)    # x[:, w-1, :]
    right = jnp.concatenate([buf[:, 1:, :], zcol], axis=1)       # x[:, w+1, :]

    acc = jnp.zeros((M, Cout), jnp.float32)
    if fold_dx:
        # K = 3*Cin: fold the dx taps onto the lane axis (better fills deep
        # MXUs when Cin == 128); three MXU matmuls on aligned row-slices.
        big = jnp.concatenate([left, buf, right], axis=-1)
        big = big.reshape((TH + 2) * W, 3 * Cin)
        for dy in range(3):
            acc = acc + jnp.dot(big[dy * W:dy * W + M, :], w_ref[dy],
                                preferred_element_type=jnp.float32)
    else:
        # K = Cin (multiple of 128): nine accumulating matmuls on aligned
        # slices -- avoids materializing the 3x-wide operand for wide layers.
        taps = (left.reshape((TH + 2) * W, Cin),
                buf.reshape((TH + 2) * W, Cin),
                right.reshape((TH + 2) * W, Cin))
        for dy in range(3):
            for dx in range(3):
                acc = acc + jnp.dot(taps[dx][dy * W:dy * W + M, :],
                                    w_ref[dy, dx],
                                    preferred_element_type=jnp.float32)

    # Folded-BN bias + ReLU (BN scale already folded into the weights).
    y = jnp.maximum(acc + bias_ref[...], 0.0)
    y = y.reshape(TH, W, Cout).astype(o_ref.dtype)

    # Keep padded rows / columns exactly zero so the next layer's halos and
    # shifted taps stay exact (bf16 select, built only when padding exists).
    valid = None
    if w_valid is not None:
        col = lax.broadcasted_iota(jnp.int32, (1, W, 1), 1)
        valid = col < w_valid
    if h_valid is not None:
        row = lax.broadcasted_iota(jnp.int32, (TH, 1, 1), 0) + t * TH
        rmask = row < h_valid
        valid = rmask if valid is None else jnp.logical_and(valid, rmask)
    if valid is not None:
        y = jnp.where(valid, y, jnp.zeros_like(y))

    o_ref[...] = y[None]


def conv_bn_relu(x, w, bias, *, tile_h, w_valid, h_valid, fold_dx,
                 vmem_limit, single_buffer_weights):
    """One fused Conv3x3(no bias) + folded-BN + ReLU layer.

    x:    (N, Hp, Wp, Cin) bf16, Hp % tile_h == 0, Wp % 16 == 0, Cin % 128 == 0
    w:    (3, 3*Cin, Cout) or (3, 3, Cin, Cout) bf16 (BN scale pre-folded)
    bias: (1, Cout) f32
    """
    N, Hp, Wp, Cin = x.shape
    Cout = bias.shape[-1]
    T = Hp // tile_h
    kernel = functools.partial(_conv3x3_bn_relu_kernel, w_valid=w_valid,
                               h_valid=h_valid, fold_dx=fold_dx)
    const_kw = {}
    if single_buffer_weights:
        # Constant-index operands: single VMEM copy instead of double buffer.
        const_kw["pipeline_mode"] = pl.Buffered(1)
    w_ndim = w.ndim
    in_specs = [
        pl.BlockSpec((1, tile_h, Wp, Cin), lambda n, t: (n, t, 0, 0)),
        # 1-row halos above / below the tile (index clamped at the image
        # border; the kernel zeroes them there).
        pl.BlockSpec((1, 1, Wp, Cin),
                     lambda n, t: (n, jnp.maximum(t * tile_h - 1, 0), 0, 0)),
        pl.BlockSpec((1, 1, Wp, Cin),
                     lambda n, t: (n, jnp.minimum((t + 1) * tile_h, Hp - 1),
                                   0, 0)),
        pl.BlockSpec(w.shape, lambda n, t: (0,) * w_ndim, **const_kw),
        pl.BlockSpec(bias.shape, lambda n, t: (0, 0), **const_kw),
    ]
    return pl.pallas_call(
        kernel,
        out_shape=jax.ShapeDtypeStruct((N, Hp, Wp, Cout), jnp.bfloat16),
        grid=(N, T),
        in_specs=in_specs,
        out_specs=pl.BlockSpec((1, tile_h, Wp, Cout),
                               lambda n, t: (n, t, 0, 0)),
        compiler_params=pltpu.CompilerParams(
            dimension_semantics=("parallel", "parallel"),
            vmem_limit_bytes=vmem_limit),
    )(x, x, x, w, bias)


# ----------------------------------------------------------------------------
# Glue (plain JAX, NHWC): bilinear upsample + concat.  Run under jax.jit.
# ----------------------------------------------------------------------------
def _resize_coords(out_size, in_size, align_corners):
    if align_corners and out_size > 1:
        src = jnp.arange(out_size, dtype=jnp.float32) * (
            (in_size - 1) / (out_size - 1))
    else:
        scale = in_size / out_size
        src = (jnp.arange(out_size, dtype=jnp.float32) + 0.5) * scale - 0.5
        src = jnp.maximum(src, 0.0)
    i0 = jnp.minimum(jnp.floor(src).astype(jnp.int32), in_size - 1)
    i1 = jnp.minimum(i0 + 1, in_size - 1)
    frac = src - i0.astype(jnp.float32)
    return i0, i1, frac


def bilinear_upsample_nhwc(x, H, W, *, align_corners=False):
    """F.upsample(..., mode='bilinear'), NHWC layout.

    Note: legacy (pre-0.4) torch F.upsample behaved like align_corners=True;
    the modern default (implemented here by default) is align_corners=False.
    """
    y0, y1, fy = _resize_coords(H, x.shape[1], align_corners)
    x0, x1, fx = _resize_coords(W, x.shape[2], align_corners)
    r0 = x[:, y0, :, :]
    r1 = x[:, y1, :, :]
    rows = r0 * (1.0 - fy)[None, :, None, None] + r1 * fy[None, :, None, None]
    c0 = rows[:, :, x0, :]
    c1 = rows[:, :, x1, :]
    return c0 * (1.0 - fx)[None, None, :, None] + c1 * fx[None, None, :, None]


def prepare_params(params, in_channels):
    """Fold BN scale into the weights (f32), pad channels to LANE multiples,
    choose the per-layer weight layout, cast to bf16."""
    prepared = []
    couts = []
    cin = in_channels
    for p in params:
        w = p["w"]                                   # (3, 3, cin, cout) HWIO
        cout = w.shape[-1]
        cin_p = _round_up(cin, LANE)
        cout_p = _round_up(cout, LANE)
        w_scaled = w * p["scale"][None, None, None, :]   # fold BN scale in f32
        w_pad = jnp.zeros((3, 3, cin_p, cout_p), jnp.float32)
        w_pad = w_pad.at[:, :, :cin, :cout].set(w_scaled)
        # Fold dx taps into K only for 128-wide layers (better MXU depth fill
        # on 256-deep MXUs at small copy cost); wide layers keep per-tap
        # weights and 9 accumulating K=Cin matmuls.
        if cin_p == LANE:
            w_arr = w_pad.reshape(3, 3 * cin_p, cout_p)
        else:
            w_arr = w_pad
        bias = jnp.zeros((1, cout_p), jnp.float32).at[0, :cout].set(p["bias"])
        prepared.append({"w": w_arr.astype(jnp.bfloat16), "b": bias})
        couts.append(cout)
        cin = cout
    return prepared, tuple(couts)


def stack_decoder_forward(prepared, x_big, x, *, couts, max_tile_h=None,
                          align_corners=False, single_buffer_weights=True):
    """x_big: (N, C_big, H, W), x: (N, C_x, h, w) NCHW -> (N, y_ch, H, W).

    Wrap in jax.jit so the NCHW->NHWC transposes, upsample, concat, pad and
    bf16 cast fuse into as few HBM passes as XLA allows.
    """
    N, _, H, W = x_big.shape
    xb = jnp.transpose(x_big, (0, 2, 3, 1))
    xs = jnp.transpose(x, (0, 2, 3, 1))
    y = bilinear_upsample_nhwc(xs, H, W, align_corners=align_corners)
    y = jnp.concatenate([y, xb], axis=-1)            # (N, H, W, C_x + C_big)

    cin = y.shape[-1]
    w0 = prepared[0]["w"]
    cin_p0 = w0.shape[1] // 3 if w0.ndim == 3 else w0.shape[2]
    wp = _round_up(W, SUBLANE)
    hp = _round_up(H, SUBLANE)
    y = jnp.pad(y, ((0, 0), (0, hp - H), (0, wp - W), (0, cin_p0 - cin)))
    y = y.astype(jnp.bfloat16)

    vmem_limit = _vmem_limit_bytes()
    w_valid = None if wp == W else W
    h_valid = None if hp == H else H
    for p in prepared:
        w = p["w"]
        fold_dx = (w.ndim == 3)
        cin_p = w.shape[1] // 3 if fold_dx else w.shape[2]
        cout_p = w.shape[-1]
        tile_h = _choose_tile_h(N, hp, wp, cin_p, cout_p, fold_dx, vmem_limit,
                                max_tile_h, single_buffer_weights)
        y = conv_bn_relu(y, w, p["b"], tile_h=tile_h, w_valid=w_valid,
                         h_valid=h_valid, fold_dx=fold_dx,
                         vmem_limit=vmem_limit,
                         single_buffer_weights=single_buffer_weights)

    y = y[:, :H, :W, :couts[-1]].astype(jnp.float32)
    return jnp.transpose(y, (0, 3, 1, 2))


def stack_decoder_reference(params, x_big, x, *, align_corners=False):
    """Pure-JAX reference (lax.conv) with the same eval-mode BN folding and
    bf16 operand rounding as the kernel path."""
    _, _, H, W = x_big.shape
    xb = jnp.transpose(x_big, (0, 2, 3, 1))
    xs = jnp.transpose(x, (0, 2, 3, 1))
    y = bilinear_upsample_nhwc(xs, H, W, align_corners=align_corners)
    y = jnp.concatenate([y, xb], axis=-1)
    for p in params:
        w_b = (p["w"] * p["scale"][None, None, None, :]).astype(jnp.bfloat16)
        y = lax.conv_general_dilated(
            y.astype(jnp.bfloat16), w_b,
            window_strides=(1, 1), padding="SAME",
            dimension_numbers=("NHWC", "HWIO", "NHWC"),
            preferred_element_type=jnp.float32)
        y = jnp.maximum(y + p["bias"], 0.0).astype(jnp.bfloat16)
    return jnp.transpose(y.astype(jnp.float32), (0, 3, 1, 2))


def init_params(key, x_big_channels, x_channels, y_channels):
    cins = [x_big_channels + x_channels, y_channels, y_channels]
    params = []
    for cin in cins:
        cout = y_channels
        kw, kg, kb, km, kv, key = jax.random.split(key, 6)
        w = jax.random.normal(kw, (3, 3, cin, cout), jnp.float32)
        w = w * (1.0 / jnp.sqrt(9.0 * cin))
        gamma = 1.0 + 0.1 * jax.random.normal(kg, (cout,), jnp.float32)
        beta = 0.1 * jax.random.normal(kb, (cout,), jnp.float32)
        rmean = 0.1 * jax.random.normal(km, (cout,), jnp.float32)
        rvar = jnp.abs(jax.random.normal(kv, (cout,), jnp.float32)) + 0.5
        scale = gamma / jnp.sqrt(rvar + BN_EPS)      # fold BN (eval mode)
        bias = beta - rmean * scale
        params.append({"w": w, "scale": scale, "bias": bias})
    return params


if __name__ == "__main__":
    key = jax.random.PRNGKey(0)
    N = 2
    x_big_channels, x_channels, y_channels = 4, 4, 8
    H, W = 18, 12          # not multiples of 16 -> exercises H/W pad + masks
    h, w = 9, 6            # standard UNet 2x upsample ratio

    k1, k2, kp = jax.random.split(key, 3)
    x_big = jax.random.normal(k1, (N, x_big_channels, H, W), jnp.float32)
    x = jax.random.normal(k2, (N, x_channels, h, w), jnp.float32)

    params = init_params(kp, x_big_channels, x_channels, y_channels)
    prepared, couts = prepare_params(params, x_big_channels + x_channels)

    # max_tile_h=8 -> several row-tiles per image: exercises halo exchange.
    def build_fwd(single_buffer_weights):
        return jax.jit(functools.partial(
            stack_decoder_forward, couts=couts, max_tile_h=8,
            single_buffer_weights=single_buffer_weights))

    try:
        y = build_fwd(True)(prepared, x_big, x)
        jax.block_until_ready(y)
    except Exception:
        # Fallback if this JAX build rejects pl.Buffered(1) single-buffering
        # of the constant weight / bias operands.
        y = build_fwd(False)(prepared, x_big, x)
        jax.block_until_ready(y)

    y_ref = stack_decoder_reference(params, x_big, x)
    assert y.shape == (N, y_channels, H, W), y.shape
    diff = jnp.abs(y - y_ref)
    tol = 1e-2 + 2e-2 * jnp.abs(y_ref)   # bf16 matmul operands / activations
    assert bool(jnp.all(diff <= tol)), float(jnp.max(diff))
    print("KERNEL_OK")
</pallas_src>

<mosaic_0001>
module attributes {stable_mosaic.version = 11 : i64} {
  func.func @_conv3x3_bn_relu_kernel(%arg0: i32, %arg1: i32, %arg2: memref<1x8x16x128xbf16, #tpu.memory_space<vmem>>, %arg3: memref<1x1x16x128xbf16, #tpu.memory_space<vmem>>, %arg4: memref<1x1x16x128xbf16, #tpu.memory_space<vmem>>, %arg5: memref<3x384x128xbf16, #tpu.memory_space<vmem>>, %arg6: memref<1x128xf32, #tpu.memory_space<vmem>>, %arg7: memref<1x8x16x128xbf16, #tpu.memory_space<vmem>>) attributes {dimension_semantics = [#tpu.dimension_semantics<parallel>, #tpu.dimension_semantics<parallel>], iteration_bounds = array<i64: 2, 4>, scalar_prefetch = 0 : i64, scratch_operands = 0 : i64, tpu.core_type = #tpu.core_type<tc>, window_params = [{transform_indices = @transform_0, window_bounds = array<i64: 1, 8, 16, 128>}, {transform_indices = @transform_1, window_bounds = array<i64: 1, 1, 16, 128>}, {transform_indices = @transform_2, window_bounds = array<i64: 1, 1, 16, 128>}, {pipeline_mode = #tpu.pipeline_mode<synchronous>, transform_indices = @transform_3, window_bounds = array<i64: 3, 384, 128>}, {pipeline_mode = #tpu.pipeline_mode<synchronous>, transform_indices = @transform_4, window_bounds = array<i64: 1, 128>}, {transform_indices = @transform_5, window_bounds = array<i64: 1, 8, 16, 128>}]} {
    %c0 = arith.constant 0 : index
    %c0_0 = arith.constant 0 : index
    %c0_1 = arith.constant 0 : index
    %c0_2 = arith.constant 0 : index
    %0 = vector.load %arg2[%c0, %c0_0, %c0_1, %c0_2] : memref<1x8x16x128xbf16, #tpu.memory_space<vmem>>, vector<1x8x16x128xbf16>
    %1 = vector.shape_cast %0 : vector<1x8x16x128xbf16> to vector<8x16x128xbf16>
    %c0_i32 = arith.constant 0 : i32
    %2 = arith.cmpi sgt, %arg1, %c0_i32 : i32
    %c0_3 = arith.constant 0 : index
    %c0_4 = arith.constant 0 : index
    %c0_5 = arith.constant 0 : index
    %c0_6 = arith.constant 0 : index
    %3 = vector.load %arg3[%c0_3, %c0_4, %c0_5, %c0_6] : memref<1x1x16x128xbf16, #tpu.memory_space<vmem>>, vector<1x1x16x128xbf16>
    %4 = vector.shape_cast %3 : vector<1x1x16x128xbf16> to vector<1x16x128xbf16>
    %cst = arith.constant 0.000000e+00 : bf16
    %5 = vector.broadcast %cst : bf16 to vector<1x16x128xbf16>
    %6 = arith.select %2, %4, %5 : vector<1x16x128xbf16>
    %c3_i32 = arith.constant 3 : i32
    %7 = arith.cmpi slt, %arg1, %c3_i32 : i32
    %c0_7 = arith.constant 0 : index
    %c0_8 = arith.constant 0 : index
    %c0_9 = arith.constant 0 : index
    %c0_10 = arith.constant 0 : index
    %8 = vector.load %arg4[%c0_7, %c0_8, %c0_9, %c0_10] : memref<1x1x16x128xbf16, #tpu.memory_space<vmem>>, vector<1x1x16x128xbf16>
    %9 = vector.shape_cast %8 : vector<1x1x16x128xbf16> to vector<1x16x128xbf16>
    %cst_11 = arith.constant 0.000000e+00 : bf16
    %10 = vector.broadcast %cst_11 : bf16 to vector<1x16x128xbf16>
    %11 = arith.select %7, %9, %10 : vector<1x16x128xbf16>
    %12 = tpu.concatenate %6, %1, %11 in 0 : vector<1x16x128xbf16>, vector<8x16x128xbf16>, vector<1x16x128xbf16> -> vector<10x16x128xbf16>
    %cst_12 = arith.constant 0.000000e+00 : bf16
    %13 = vector.broadcast %cst_12 : bf16 to vector<10x1x128xbf16>
    %14 = vector.extract_strided_slice %12 {offsets = [0, 0, 0], sizes = [10, 15, 128], strides = [1, 1, 1]} : vector<10x16x128xbf16> to vector<10x15x128xbf16>
    %15 = tpu.concatenate %13, %14 in 1 : vector<10x1x128xbf16>, vector<10x15x128xbf16> -> vector<10x16x128xbf16>
    %16 = vector.extract_strided_slice %12 {offsets = [0, 1, 0], sizes = [10, 15, 128], strides = [1, 1, 1]} : vector<10x16x128xbf16> to vector<10x15x128xbf16>
    %17 = tpu.concatenate %16, %13 in 1 : vector<10x15x128xbf16>, vector<10x1x128xbf16> -> vector<10x16x128xbf16>
    %cst_13 = arith.constant 0.000000e+00 : f32
    %18 = vector.broadcast %cst_13 : f32 to vector<128x128xf32>
    %19 = tpu.concatenate %15, %12, %17 in 2 : vector<10x16x128xbf16>, vector<10x16x128xbf16>, vector<10x16x128xbf16> -> vector<10x16x384xbf16>
    %20 = vector.shape_cast %19 : vector<10x16x384xbf16> to vector<160x384xbf16>
    %21 = vector.extract_strided_slice %20 {offsets = [0, 0], sizes = [128, 384], strides = [1, 1]} : vector<160x384xbf16> to vector<128x384xbf16>
    %c0_14 = arith.constant 0 : index
    %c0_15 = arith.constant 0 : index
    %c0_16 = arith.constant 0 : index
    %22 = vector.load %arg5[%c0_14, %c0_15, %c0_16] : memref<3x384x128xbf16, #tpu.memory_space<vmem>>, vector<1x384x128xbf16>
    %23 = vector.shape_cast %22 : vector<1x384x128xbf16> to vector<384x128xbf16>
    %cst_17 = arith.constant dense<0.000000e+00> : vector<128x128xf32>
    %24 = tpu.matmul %21, %23, %cst_17 {dimension_numbers = #tpu.dot_dimension_numbers<[1], [0], [0], [1], [0, 0, 1, 1], [], []>} : vector<128x384xbf16>, vector<384x128xbf16>, vector<128x128xf32> -> vector<128x128xf32>
    %25 = arith.addf %18, %24 : vector<128x128xf32>
    %26 = vector.extract_strided_slice %20 {offsets = [16, 0], sizes = [128, 384], strides = [1, 1]} : vector<160x384xbf16> to vector<128x384xbf16>
    %c1 = arith.constant 1 : index
    %c0_18 = arith.constant 0 : index
    %c0_19 = arith.constant 0 : index
    %27 = vector.load %arg5[%c1, %c0_18, %c0_19] : memref<3x384x128xbf16, #tpu.memory_space<vmem>>, vector<1x384x128xbf16>
    %28 = vector.shape_cast %27 : vector<1x384x128xbf16> to vector<384x128xbf16>
    %cst_20 = arith.constant dense<0.000000e+00> : vector<128x128xf32>
    %29 = tpu.matmul %26, %28, %cst_20 {dimension_numbers = #tpu.dot_dimension_numbers<[1], [0], [0], [1], [0, 0, 1, 1], [], []>} : vector<128x384xbf16>, vector<384x128xbf16>, vector<128x128xf32> -> vector<128x128xf32>
    %30 = arith.addf %25, %29 : vector<128x128xf32>
    %31 = vector.extract_strided_slice %20 {offsets = [32, 0], sizes = [128, 384], strides = [1, 1]} : vector<160x384xbf16> to vector<128x384xbf16>
    %c2 = arith.constant 2 : index
    %c0_21 = arith.constant 0 : index
    %c0_22 = arith.constant 0 : index
    %32 = vector.load %arg5[%c2, %c0_21, %c0_22] : memref<3x384x128xbf16, #tpu.memory_space<vmem>>, vector<1x384x128xbf16>
    %33 = vector.shape_cast %32 : vector<1x384x128xbf16> to vector<384x128xbf16>
    %cst_23 = arith.constant dense<0.000000e+00> : vector<128x128xf32>
    %34 = tpu.matmul %31, %33, %cst_23 {dimension_numbers = #tpu.dot_dimension_numbers<[1], [0], [0], [1], [0, 0, 1, 1], [], []>} : vector<128x384xbf16>, vector<384x128xbf16>, vector<128x128xf32> -> vector<128x128xf32>
    %35 = arith.addf %30, %34 : vector<128x128xf32>
    %c0_24 = arith.constant 0 : index
    %c0_25 = arith.constant 0 : index
    %36 = vector.load %arg6[%c0_24, %c0_25] : memref<1x128xf32, #tpu.memory_space<vmem>>, vector<1x128xf32>
    %37 = vector.broadcast %36 : vector<1x128xf32> to vector<128x128xf32>
    %38 = arith.addf %35, %37 : vector<128x128xf32>
    %cst_26 = arith.constant 0.000000e+00 : f32
    %39 = vector.broadcast %cst_26 : f32 to vector<128x128xf32>
    %40 = arith.maximumf %38, %39 : vector<128x128xf32>
    %41 = vector.shape_cast %40 : vector<128x128xf32> to vector<8x16x128xf32>
    %42 = arith.truncf %41 : vector<8x16x128xf32> to vector<8x16x128xbf16>
    %43 = tpu.iota {dimensions = array<i32: 1>} : vector<1x16x1xi32>
    %c12_i32 = arith.constant 12 : i32
    %44 = vector.broadcast %c12_i32 : i32 to vector<1x16x1xi32>
    %45 = arith.cmpi slt, %43, %44 : vector<1x16x1xi32>
    %46 = tpu.iota {dimensions = array<i32: 0>} : vector<8x1x1xi32>
    %c8_i32 = arith.constant 8 : i32
    %47 = arith.muli %arg1, %c8_i32 : i32
    %48 = vector.broadcast %47 : i32 to vector<8x1x1xi32>
    %49 = arith.addi %46, %48 : vector<8x1x1xi32>
    %c18_i32 = arith.constant 18 : i32
    %50 = vector.broadcast %c18_i32 : i32 to vector<8x1x1xi32>
    %51 = arith.cmpi slt, %49, %50 : vector<8x1x1xi32>
    %52 = vector.broadcast %45 : vector<1x16x1xi1> to vector<8x16x1xi1>
    %53 = vector.broadcast %51 : vector<8x1x1xi1> to vector<8x16x1xi1>
    %54 = arith.andi %52, %53 : vector<8x16x1xi1>
    %cst_27 = arith.constant 0.000000e+00 : bf16
    %55 = vector.broadcast %cst_27 : bf16 to vector<8x16x128xbf16>
    %56 = vector.shape_cast %54 : vector<8x16x1xi1> to vector<8x16x1xi1>
    %57 = vector.broadcast %56 : vector<8x16x1xi1> to vector<8x16x128xi1>
    %58 = arith.select %57, %42, %55 : vector<8x16x128xi1>, vector<8x16x128xbf16>
    %59 = vector.shape_cast %58 : vector<8x16x128xbf16> to vector<1x8x16x128xbf16>
    %c0_28 = arith.constant 0 : index
    %c0_29 = arith.constant 0 : index
    %c0_30 = arith.constant 0 : index
    %c0_31 = arith.constant 0 : index
    %60 = vector.load %arg7[%c0_28, %c0_29, %c0_30, %c0_31] : memref<1x8x16x128xbf16, #tpu.memory_space<vmem>>, vector<1x8x16x128xbf16>
    tpu.vector_store %arg7[%c0_28, %c0_29, %c0_30, %c0_31], %59 {strides = array<i32>} : memref<1x8x16x128xbf16, #tpu.memory_space<vmem>>, vector<1x8x16x128xbf16>,
    return
  }
  func.func @transform_0(%arg0: i32, %arg1: i32) -> (i32, i32, i32, i32) {
    %c0_i32 = arith.constant 0 : i32
    %c0_i32_0 = arith.constant 0 : i32
    %c0_i32_1 = arith.constant 0 : i32
    return %arg0, %arg1, %c0_i32, %c0_i32_0 : i32, i32, i32, i32
  }
  func.func @transform_1(%arg0: i32, %arg1: i32) -> (i32, i32, i32, i32) {
    %c8_i32 = arith.constant 8 : i32
    %0 = arith.muli %arg1, %c8_i32 : i32
    %c1_i32 = arith.constant 1 : i32
    %1 = arith.subi %0, %c1_i32 : i32
    %c0_i32 = arith.constant 0 : i32
    %2 = arith.maxsi %1, %c0_i32 : i32
    %c0_i32_0 = arith.constant 0 : i32
    %c0_i32_1 = arith.constant 0 : i32
    %c0_i32_2 = arith.constant 0 : i32
    return %arg0, %2, %c0_i32_0, %c0_i32_1 : i32, i32, i32, i32
  }
  func.func @transform_2(%arg0: i32, %arg1: i32) -> (i32, i32, i32, i32) {
    %c1_i32 = arith.constant 1 : i32
    %0 = arith.addi %arg1, %c1_i32 : i32
    %c8_i32 = arith.constant 8 : i32
    %1 = arith.muli %0, %c8_i32 : i32
    %c31_i32 = arith.constant 31 : i32
    %2 = arith.minsi %1, %c31_i32 : i32
    %c0_i32 = arith.constant 0 : i32
    %c0_i32_0 = arith.constant 0 : i32
    %c0_i32_1 = arith.constant 0 : i32
    return %arg0, %2, %c0_i32, %c0_i32_0 : i32, i32, i32, i32
  }
  func.func @transform_3(%arg0: i32, %arg1: i32) -> (i32, i32, i32) {
    %c0_i32 = arith.constant 0 : i32
    %c0_i32_0 = arith.constant 0 : i32
    %c0_i32_1 = arith.constant 0 : i32
    %c0_i32_2 = arith.constant 0 : i32
    return %c0_i32, %c0_i32_0, %c0_i32_1 : i32, i32, i32
  }
  func.func @transform_4(%arg0: i32, %arg1: i32) -> (i32, i32) {
    %c0_i32 = arith.constant 0 : i32
    %c0_i32_0 = arith.constant 0 : i32
    %c0_i32_1 = arith.constant 0 : i32
    return %c0_i32, %c0_i32_0 : i32, i32
  }
  func.func @transform_5(%arg0: i32, %arg1: i32) -> (i32, i32, i32, i32) {
    %c0_i32 = arith.constant 0 : i32
    %c0_i32_0 = arith.constant 0 : i32
    %c0_i32_1 = arith.constant 0 : i32
    return %arg0, %arg1, %c0_i32, %c0_i32_0 : i32, i32, i32, i32
  }
}

module attributes {stable_mosaic.version = 11 : i64} {
  func.func @_conv3x3_bn_relu_kernel(%arg0: i32, %arg1: i32, %arg2: memref<1x8x16x128xbf16, #tpu.memory_space<vmem>>, %arg3: memref<1x1x16x128xbf16, #tpu.memory_space<vmem>>, %arg4: memref<1x1x16x128xbf16, #tpu.memory_space<vmem>>, %arg5: memref<3x384x128xbf16, #tpu.memory_space<vmem>>, %arg6: memref<1x128xf32, #tpu.memory_space<vmem>>, %arg7: memref<1x8x16x128xbf16, #tpu.memory_space<vmem>>) attributes {dimension_semantics = [#tpu.dimension_semantics<parallel>, #tpu.dimension_semantics<parallel>], iteration_bounds = array<i64: 2, 4>, scalar_prefetch = 0 : i64, scratch_operands = 0 : i64, tpu.core_type = #tpu.core_type<tc>, window_params = [{transform_indices = @transform_0, window_bounds = array<i64: 1, 8, 16, 128>}, {transform_indices = @transform_1, window_bounds = array<i64: 1, 1, 16, 128>}, {transform_indices = @transform_2, window_bounds = array<i64: 1, 1, 16, 128>}, {pipeline_mode = #tpu.pipeline_mode<synchronous>, transform_indices = @transform_3, window_bounds = array<i64: 3, 384, 128>}, {pipeline_mode = #tpu.pipeline_mode<synchronous>, transform_indices = @transform_4, window_bounds = array<i64: 1, 128>}, {transform_indices = @transform_5, window_bounds = array<i64: 1, 8, 16, 128>}]} {
    %c0 = arith.constant 0 : index
    %c0_0 = arith.constant 0 : index
    %c0_1 = arith.constant 0 : index
    %c0_2 = arith.constant 0 : index
    %0 = vector.load %arg2[%c0, %c0_0, %c0_1, %c0_2] : memref<1x8x16x128xbf16, #tpu.memory_space<vmem>>, vector<1x8x16x128xbf16>
    %1 = vector.shape_cast %0 : vector<1x8x16x128xbf16> to vector<8x16x128xbf16>
    %c0_i32 = arith.constant 0 : i32
    %2 = arith.cmpi sgt, %arg1, %c0_i32 : i32
    %c0_3 = arith.constant 0 : index
    %c0_4 = arith.constant 0 : index
    %c0_5 = arith.constant 0 : index
    %c0_6 = arith.constant 0 : index
    %3 = vector.load %arg3[%c0_3, %c0_4, %c0_5, %c0_6] : memref<1x1x16x128xbf16, #tpu.memory_space<vmem>>, vector<1x1x16x128xbf16>
    %4 = vector.shape_cast %3 : vector<1x1x16x128xbf16> to vector<1x16x128xbf16>
    %cst = arith.constant 0.000000e+00 : bf16
    %5 = vector.broadcast %cst : bf16 to vector<1x16x128xbf16>
    %6 = arith.select %2, %4, %5 : vector<1x16x128xbf16>
    %c3_i32 = arith.constant 3 : i32
    %7 = arith.cmpi slt, %arg1, %c3_i32 : i32
    %c0_7 = arith.constant 0 : index
    %c0_8 = arith.constant 0 : index
    %c0_9 = arith.constant 0 : index
    %c0_10 = arith.constant 0 : index
    %8 = vector.load %arg4[%c0_7, %c0_8, %c0_9, %c0_10] : memref<1x1x16x128xbf16, #tpu.memory_space<vmem>>, vector<1x1x16x128xbf16>
    %9 = vector.shape_cast %8 : vector<1x1x16x128xbf16> to vector<1x16x128xbf16>
    %cst_11 = arith.constant 0.000000e+00 : bf16
    %10 = vector.broadcast %cst_11 : bf16 to vector<1x16x128xbf16>
    %11 = arith.select %7, %9, %10 : vector<1x16x128xbf16>
    %12 = tpu.concatenate %6, %1, %11 in 0 : vector<1x16x128xbf16>, vector<8x16x128xbf16>, vector<1x16x128xbf16> -> vector<10x16x128xbf16>
    %cst_12 = arith.constant 0.000000e+00 : bf16
    %13 = vector.broadcast %cst_12 : bf16 to vector<10x1x128xbf16>
    %14 = vector.extract_strided_slice %12 {offsets = [0, 0, 0], sizes = [10, 15, 128], strides = [1, 1, 1]} : vector<10x16x128xbf16> to vector<10x15x128xbf16>
    %15 = tpu.concatenate %13, %14 in 1 : vector<10x1x128xbf16>, vector<10x15x128xbf16> -> vector<10x16x128xbf16>
    %16 = vector.extract_strided_slice %12 {offsets = [0, 1, 0], sizes = [10, 15, 128], strides = [1, 1, 1]} : vector<10x16x128xbf16> to vector<10x15x128xbf16>
    %17 = tpu.concatenate %16, %13 in 1 : vector<10x15x128xbf16>, vector<10x1x128xbf16> -> vector<10x16x128xbf16>
    %cst_13 = arith.constant 0.000000e+00 : f32
    %18 = vector.broadcast %cst_13 : f32 to vector<128x128xf32>
    %19 = tpu.concatenate %15, %12, %17 in 2 : vector<10x16x128xbf16>, vector<10x16x128xbf16>, vector<10x16x128xbf16> -> vector<10x16x384xbf16>
    %20 = vector.shape_cast %19 : vector<10x16x384xbf16> to vector<160x384xbf16>
    %21 = vector.extract_strided_slice %20 {offsets = [0, 0], sizes = [128, 384], strides = [1, 1]} : vector<160x384xbf16> to vector<128x384xbf16>
    %c0_14 = arith.constant 0 : index
    %c0_15 = arith.constant 0 : index
    %c0_16 = arith.constant 0 : index
    %22 = vector.load %arg5[%c0_14, %c0_15, %c0_16] : memref<3x384x128xbf16, #tpu.memory_space<vmem>>, vector<1x384x128xbf16>
    %23 = vector.shape_cast %22 : vector<1x384x128xbf16> to vector<384x128xbf16>
    %cst_17 = arith.constant dense<0.000000e+00> : vector<128x128xf32>
    %24 = tpu.matmul %21, %23, %cst_17 {dimension_numbers = #tpu.dot_dimension_numbers<[1], [0], [0], [1], [0, 0, 1, 1], [], []>} : vector<128x384xbf16>, vector<384x128xbf16>, vector<128x128xf32> -> vector<128x128xf32>
    %25 = arith.addf %18, %24 : vector<128x128xf32>
    %26 = vector.extract_strided_slice %20 {offsets = [16, 0], sizes = [128, 384], strides = [1, 1]} : vector<160x384xbf16> to vector<128x384xbf16>
    %c1 = arith.constant 1 : index
    %c0_18 = arith.constant 0 : index
    %c0_19 = arith.constant 0 : index
    %27 = vector.load %arg5[%c1, %c0_18, %c0_19] : memref<3x384x128xbf16, #tpu.memory_space<vmem>>, vector<1x384x128xbf16>
    %28 = vector.shape_cast %27 : vector<1x384x128xbf16> to vector<384x128xbf16>
    %cst_20 = arith.constant dense<0.000000e+00> : vector<128x128xf32>
    %29 = tpu.matmul %26, %28, %cst_20 {dimension_numbers = #tpu.dot_dimension_numbers<[1], [0], [0], [1], [0, 0, 1, 1], [], []>} : vector<128x384xbf16>, vector<384x128xbf16>, vector<128x128xf32> -> vector<128x128xf32>
    %30 = arith.addf %25, %29 : vector<128x128xf32>
    %31 = vector.extract_strided_slice %20 {offsets = [32, 0], sizes = [128, 384], strides = [1, 1]} : vector<160x384xbf16> to vector<128x384xbf16>
    %c2 = arith.constant 2 : index
    %c0_21 = arith.constant 0 : index
    %c0_22 = arith.constant 0 : index
    %32 = vector.load %arg5[%c2, %c0_21, %c0_22] : memref<3x384x128xbf16, #tpu.memory_space<vmem>>, vector<1x384x128xbf16>
    %33 = vector.shape_cast %32 : vector<1x384x128xbf16> to vector<384x128xbf16>
    %cst_23 = arith.constant dense<0.000000e+00> : vector<128x128xf32>
    %34 = tpu.matmul %31, %33, %cst_23 {dimension_numbers = #tpu.dot_dimension_numbers<[1], [0], [0], [1], [0, 0, 1, 1], [], []>} : vector<128x384xbf16>, vector<384x128xbf16>, vector<128x128xf32> -> vector<128x128xf32>
    %35 = arith.addf %30, %34 : vector<128x128xf32>
    %c0_24 = arith.constant 0 : index
    %c0_25 = arith.constant 0 : index
    %36 = vector.load %arg6[%c0_24, %c0_25] : memref<1x128xf32, #tpu.memory_space<vmem>>, vector<1x128xf32>
    %37 = vector.broadcast %36 : vector<1x128xf32> to vector<128x128xf32>
    %38 = arith.addf %35, %37 : vector<128x128xf32>
    %cst_26 = arith.constant 0.000000e+00 : f32
    %39 = vector.broadcast %cst_26 : f32 to vector<128x128xf32>
    %40 = arith.maximumf %38, %39 : vector<128x128xf32>
    %41 = vector.shape_cast %40 : vector<128x128xf32> to vector<8x16x128xf32>
    %42 = arith.truncf %41 : vector<8x16x128xf32> to vector<8x16x128xbf16>
    %43 = tpu.iota {dimensions = array<i32: 1>} : vector<1x16x1xi32>
    %c12_i32 = arith.constant 12 : i32
    %44 = vector.broadcast %c12_i32 : i32 to vector<1x16x1xi32>
    %45 = arith.cmpi slt, %43, %44 : vector<1x16x1xi32>
    %46 = tpu.iota {dimensions = array<i32: 0>} : vector<8x1x1xi32>
    %c8_i32 = arith.constant 8 : i32
    %47 = arith.muli %arg1, %c8_i32 : i32
    %48 = vector.broadcast %47 : i32 to vector<8x1x1xi32>
    %49 = arith.addi %46, %48 : vector<8x1x1xi32>
    %c18_i32 = arith.constant 18 : i32
    %50 = vector.broadcast %c18_i32 : i32 to vector<8x1x1xi32>
    %51 = arith.cmpi slt, %49, %50 : vector<8x1x1xi32>
    %52 = vector.broadcast %45 : vector<1x16x1xi1> to vector<8x16x1xi1>
    %53 = vector.broadcast %51 : vector<8x1x1xi1> to vector<8x16x1xi1>
    %54 = arith.andi %52, %53 : vector<8x16x1xi1>
    %cst_27 = arith.constant 0.000000e+00 : bf16
    %55 = vector.broadcast %cst_27 : bf16 to vector<8x16x128xbf16>
    %56 = vector.shape_cast %54 : vector<8x16x1xi1> to vector<8x16x1xi1>
    %57 = vector.broadcast %56 : vector<8x16x1xi1> to vector<8x16x128xi1>
    %58 = arith.select %57, %42, %55 : vector<8x16x128xi1>, vector<8x16x128xbf16>
    %59 = vector.shape_cast %58 : vector<8x16x128xbf16> to vector<1x8x16x128xbf16>
    %c0_28 = arith.constant 0 : index
    %c0_29 = arith.constant 0 : index
    %c0_30 = arith.constant 0 : index
    %c0_31 = arith.constant 0 : index
    %60 = vector.load %arg7[%c0_28, %c0_29, %c0_30, %c0_31] : memref<1x8x16x128xbf16, #tpu.memory_space<vmem>>, vector<1x8x16x128xbf16>
    tpu.vector_store %arg7[%c0_28, %c0_29, %c0_30, %c0_31], %59 {strides = array<i32>} : memref<1x8x16x128xbf16, #tpu.memory_space<vmem>>, vector<1x8x16x128xbf16>,
    return
  }
  func.func @transform_0(%arg0: i32, %arg1: i32) -> (i32, i32, i32, i32) {
    %c0_i32 = arith.constant 0 : i32
    %c0_i32_0 = arith.constant 0 : i32
    %c0_i32_1 = arith.constant 0 : i32
    return %arg0, %arg1, %c0_i32, %c0_i32_0 : i32, i32, i32, i32
  }
  func.func @transform_1(%arg0: i32, %arg1: i32) -> (i32, i32, i32, i32) {
    %c8_i32 = arith.constant 8 : i32
    %0 = arith.muli %arg1, %c8_i32 : i32
    %c1_i32 = arith.constant 1 : i32
    %1 = arith.subi %0, %c1_i32 : i32
    %c0_i32 = arith.constant 0 : i32
    %2 = arith.maxsi %1, %c0_i32 : i32
    %c0_i32_0 = arith.constant 0 : i32
    %c0_i32_1 = arith.constant 0 : i32
    %c0_i32_2 = arith.constant 0 : i32
    return %arg0, %2, %c0_i32_0, %c0_i32_1 : i32, i32, i32, i32
  }
  func.func @transform_2(%arg0: i32, %arg1: i32) -> (i32, i32, i32, i32) {
    %c1_i32 = arith.constant 1 : i32
    %0 = arith.addi %arg1, %c1_i32 : i32
    %c8_i32 = arith.constant 8 : i32
    %1 = arith.muli %0, %c8_i32 : i32
    %c31_i32 = arith.constant 31 : i32
    %2 = arith.minsi %1, %c31_i32 : i32
    %c0_i32 = arith.constant 0 : i32
    %c0_i32_0 = arith.constant 0 : i32
    %c0_i32_1 = arith.constant 0 : i32
    return %arg0, %2, %c0_i32, %c0_i32_0 : i32, i32, i32, i32
  }
  func.func @transform_3(%arg0: i32, %arg1: i32) -> (i32, i32, i32) {
    %c0_i32 = arith.constant 0 : i32
    %c0_i32_0 = arith.constant 0 : i32
    %c0_i32_1 = arith.constant 0 : i32
    %c0_i32_2 = arith.constant 0 : i32
    return %c0_i32, %c0_i32_0, %c0_i32_1 : i32, i32, i32
  }
  func.func @transform_4(%arg0: i32, %arg1: i32) -> (i32, i32) {
    %c0_i32 = arith.constant 0 : i32
    %c0_i32_0 = arith.constant 0 : i32
    %c0_i32_1 = arith.constant 0 : i32
    return %c0_i32, %c0_i32_0 : i32, i32
  }
  func.func @transform_5(%arg0: i32, %arg1: i32) -> (i32, i32, i32, i32) {
    %c0_i32 = arith.constant 0 : i32
    %c0_i32_0 = arith.constant 0 : i32
    %c0_i32_1 = arith.constant 0 : i32
    return %arg0, %arg1, %c0_i32, %c0_i32_0 : i32, i32, i32, i32
  }
}

</mosaic_0001>

<bundles_post_ra>
// kernel: stack_decoder_forward.3
= control target key start
LH: loop header
LB: loop body
LE: loop exit
PB: predicated region body
PF: predicated region fallthrough
CT: control target
= control target key end

     0   :  { %s3096_s18 = smov 0   ;;  %s3098_s19 = smov 0   ;;  %s4129_s0 = inlined_call_operand.vmem [shape: bf16[2,32,16,128], index: 0, kind: input, shape index: {}, may-alias: {0,1,2}]   ;;  %s4130_s1 = inlined_call_operand.vmem [shape: bf16[2,32,16,128], index: 1, kind: input, shape index: {}, may-alias: {0,1,2}]   ;;  %s4131_s2 = inlined_call_operand.vmem [shape: bf16[2,32,16,128], index: 2, kind: input, shape index: {}, may-alias: {0,1,2}]   ;;  %s4132_s3 = inlined_call_operand.vmem [shape: bf16[3,384,128], index: 3, kind: input, shape index: {}]   ;;  %s4133_s4 = inlined_call_operand.vmem [shape: f32[1,128], index: 4, kind: input, shape index: {}]   ;;  %s4134_s5 = inlined_call_operand.vmem [shape: bf16[2,32,16,128], index: 5, kind: output, shape index: {}]  }
   0x1   :  { %s3100_s20 = smov 0   ;;  %s3102_s21 = smov 0  }
   0x2   :  { %s3104_s22 = smov 0  }
   0x3 LB: > { %s24_s23 = sadd.s32 1, %s3055_s20  ;;  %s27_s24 = sadd.s32 1, %s3059_s21  ;;  %s3063_s22 = sphi %s3104_s22, %s15_s22   ;;  %s3059_s21 = sphi %s3102_s21, %s4189_s21   ;;  %s3055_s20 = sphi %s3100_s20, %s4188_s20   ;;  %s3051_s19 = sphi %s3098_s19, %s4187_s19   ;;  %s3047_s18 = sphi %s3096_s18, %s4186_s18  }
   0x4   : > { %p25_p0 = scmp.ge.s32.totalorder %s24_s23, 4  ;;  %p2232_p1 = scmp.ge.s32.totalorder %s3063_s22, 1 }
   0x5   : > { %p273_p2 = scmp.lt.s32.totalorder %s3063_s22, 9 }
   0x6   : > { %s4191_s23 = smov (%p25_p0, %s24_s23), 0  ;;  %s4193_s24 = smov (!%p25_p0, %s27_s24), %s3059_s21 }
   0x7   : > { %p274_p3 = pnand %p2232_p1, %p273_p2  ;;  %p29_p4 = scmp.ge.s32.totalorder %s4193_s24, 2 }
   0x8   : > { %v2945_v0 = vld [vmem:[%s4132_s3 + $0x100] sm:$0xff] (!%p274_p3)   ;;  %s3137_s29 = sshll.u32 (!%p274_p3), %s3047_s18, 3  ;;  %v2948_v3 = vld [vmem:[%s4132_s3 + $0x108] sm:$0xff] (!%p274_p3)   ;;  %p338_p5 = scmp.lt.s32.totalorder (!%p274_p3), %s3051_s19, 1  ;;  %v2951_v6 = vld [vmem:[%s4132_s3 + $0x110] sm:$0xff] (!%p274_p3)   ;;  %vm601_vm0 = vcmask (!%p274_p3), 1047552  }
   0x9   : > { %s4195_s24 = smov (%p29_p4, %s4193_s24), 0  ;;  %277 = sbr.rel (%p274_p3) target bundleno = 412 (0x19c), region = 40 }
   0xa   : > { %v2946_v1 = vld [vmem:[%s4132_s3 + $0x140] sm:$0xff] (!%p274_p3)   ;;  %2472 = vmatprep.subr.bf16.mxu0 (!%p274_p3), %v2945_v0  ;;  %v2949_v4 = vld [vmem:[%s4132_s3 + $0x148] sm:$0xff] (!%p274_p3)   ;;  %p340_p6 = scmp.lt.s32.totalorder (!%p274_p3), %s3137_s29, 31  ;;  %v2952_v7 = vld [vmem:[%s4132_s3 + $0x150] sm:$0xff] (!%p274_p3)   ;;  %s3198_s7 = sadd.s32 (!%p274_p3), 4294967295, %s3137_s29  ;;  %vm558_vm1 = vcmask (!%p274_p3), 1040384  }
   0xb   : > { %v2947_v2 = vld [vmem:[%s4132_s3 + $0xc0] sm:$0xff] (!%p274_p3)   ;;  %2712 = vmatprep.subr.bf16.mxu1 (!%p274_p3), %v2946_v1  ;;  %v2950_v5 = vld [vmem:[%s4132_s3 + $0xc8] sm:$0xff] (!%p274_p3)   ;;  %v2953_v8 = vld [vmem:[%s4132_s3 + $0xd0] sm:$0xff] (!%p274_p3)   ;;  %p350_p7 = scmp.gt.s32.totalorder (!%p274_p3), %s3198_s7, 0  ;;  %p412_p8 = scmp.gt.s32.totalorder (!%p274_p3), %s3047_s18, 0 }
   0xc   : > { %2473 = vmatpush3.bf16.msra.mxu0 (!%p274_p3), %v2947_v2  ;;  %2713 = vmatpush3.bf16.msra.mxu1 (!%p274_p3), %v2946_v1  ;;  %v2954_v9 = vld [vmem:[%s4132_s3 + $0x118] sm:$0xff] (!%p274_p3)   ;;  %v2957_v12 = vld [vmem:[%s4132_s3 + $0x120] sm:$0xff] (!%p274_p3)   ;;  %v2960_v15 = vld [vmem:[%s4132_s3 + $0x128] sm:$0xff] (!%p274_p3)   ;;  %p2239_p9 = scmp.lt.s32.totalorder (!%p274_p3), %s3198_s7, 31  ;;  %vm602_vm2 = vsmask.f32 (!%p274_p3), 7424 }
   0xd   : > { %2474 = vmatprep.subr.bf16.mxu0 (!%p274_p3), %v2948_v3  ;;  %2714 = vmatprep.subr.bf16.mxu1 (!%p274_p3), %v2949_v4  ;;  %v2955_v10 = vld [vmem:[%s4132_s3 + $0x158] sm:$0xff] (!%p274_p3)   ;;  %v2958_v13 = vld [vmem:[%s4132_s3 + $0x160] sm:$0xff] (!%p274_p3)   ;;  %v2961_v16 = vld [vmem:[%s4132_s3 + $0x168] sm:$0xff] (!%p274_p3)   ;;  %vm559_vm3 = vsmask.f32 (!%p274_p3), 256  ;;  %p420_p11 = scmp.lt.s32.totalorder (!%p274_p3), %s3047_s18, 3 }
   0xe   : > { %v2956_v11 = vld [vmem:[%s4132_s3 + $0xd8] sm:$0xff] (!%p274_p3)   ;;  %v2959_v14 = vld [vmem:[%s4132_s3 + $0xe0] sm:$0xff] (!%p274_p3)   ;;  %v2962_v17 = vld [vmem:[%s4132_s3 + $0xe8] sm:$0xff] (!%p274_p3)  }
   0xf   : > { %v2963_v18 = vld [vmem:[%s4132_s3 + $0x130] sm:$0xff] (!%p274_p3)   ;;  %v2966_v21 = vld [vmem:[%s4132_s3 + $0x138] sm:$0xff] (!%p274_p3)   ;;  %vm3240_vm4 = vmand (!%p274_p3), %vm601_vm0, %vm602_vm2 }
  0x10   : > { %s4197_s19 = smov (!%p338_p5, %s3051_s19), 1  ;;  %2475 = vmatpush3.bf16.msra.mxu0 %v2950_v5  ;;  %2715 = vmatpush3.bf16.msra.mxu1 %v2949_v4  ;;  %v2964_v19 = vld [vmem:[%s4132_s3 + $0x170] sm:$0xff]   ;;  %v2967_v22 = vld [vmem:[%s4132_s3 + $0x178] sm:$0xff]   ;;  %vm3252_vm5 = vmand %vm558_vm1, %vm559_vm3 }
  0x11   : > { %s341_s26 = scalar_select %p340_p6, %s3137_s29, 31  ;;  %2476 = vmatprep.subr.bf16.mxu0 %v2951_v6  ;;  %2716 = vmatprep.subr.bf16.mxu1 %v2952_v7  ;;  %v2965_v20 = vld [vmem:[%s4132_s3 + $0xf0] sm:$0xff]   ;;  %v2968_v28 = vld [vmem:[%s4132_s3 + $0xf8] sm:$0xff]   ;;  %v2971_v34 = vld [vmem:[%s4132_s3 + $0x40] sm:$0xff]  }
  0x12   : > { %s3173_s9 = sshll.u32 %s4197_s19, 6  ;;  %v2972_v38 = vld [vmem:[%s4132_s3 + $0x1c0] sm:$0xff]   ;;  %v2975_v45 = vld [vmem:[%s4132_s3 + $0x48] sm:$0xff]   ;;  %v2979_v53 = vld [vmem:[%s4132_s3 + $0x50] sm:$0xff]  }
  0x13   : > { %s2234_s12 = sshll.u32 %s341_s26, 1  ;;  %v2973_v39 = vld [vmem:[%s4132_s3] sm:$0xff]   ;;  %v2976_v47 = vld [vmem:[%s4132_s3 + $0x8] sm:$0xff]   ;;  %v2981_v62 = vld [vmem:[%s4132_s3 + $0x10] sm:$0xff]  }
  0x14   : > { %2477 = vmatpush3.bf16.msra.mxu0 %v2953_v8  ;;  %2717 = vmatpush3.bf16.msra.mxu1 %v2952_v7  ;;  %s3185_s19 = sadd.s32 %s3173_s9, %s2234_s12  ;;  %v2974_v44 = vld [vmem:[%s4132_s3 + $0x180] sm:$0xff]   ;;  %v2980_v54 = vld [vmem:[%s4132_s3 + $0x1c8] sm:$0xff]   ;;  %v2983_v1 = vld [vmem:[%s4132_s3 + $0x58] sm:$0xff]  }
  0x15   : > { %2478 = vmatprep.subr.bf16.mxu0 %v2954_v9  ;;  %2718 = vmatprep.subr.bf16.mxu1 %v2955_v10  ;;  %s2236_s28 = sshll.u32 %s3185_s19, 2  ;;  %v2982_v60 = vld [vmem:[%s4132_s3 + $0x188] sm:$0xff]   ;;  %v2984_v5 = vld [vmem:[%s4132_s3 + $0x18] sm:$0xff]  }
  0x16   : > { %s3211_s15 = scalar_lea.vmem %s4129_s0, %s2236_s28  ;;  %s4041_s13 = scalar_lea.vmem %s4134_s5, %s2236_s28 }
  0x17   : > { %v3225_v23 = vld [vmem:[%s3211_s15] sm:$0xff]   ;;  %v3232_v26 = vld [vmem:[%s3211_s15 + $0x8] sm:$0xff]   ;;  %s3237_s6 = scalar_select %p350_p7, %s3198_s7, 0  ;;  %v3290_v48 = vld [vmem:[%s3211_s15 + $0x10] sm:$0xff]  }
  0x18   : > { %2479 = vmatpush3.bf16.msra.mxu0 %v2956_v11  ;;  %2719 = vmatpush3.bf16.msra.mxu1 %v2955_v10  ;;  %v486_v24 = vshrl.u32 %v3225_v23, 16  ;;  %v489_v25 = vshll.u32 %v3225_v23, 16  ;;  %s3246_s8 = scalar_select %p412_p8, 1, 0  ;;  %v493_v32 = vshrl.u32 %v3232_v26, 16  ;;  %v496_v33 = vshll.u32 %v3232_v26, 16 }
  0x19   : > { %2480 = vmatprep.subr.bf16.mxu0 %v2957_v12  ;;  %2720 = vmatprep.subr.bf16.mxu1 %v2958_v13  ;;  %v3295_v50 = vld [vmem:[%s3211_s15 + $0x18] sm:$0xff]   ;;  %s4199_s6 = smov (!%p2239_p9, %s3237_s6), 31  ;;  %v500_v51 = vshrl.u32 %v3290_v48, 16  ;;  %v503_v52 = vshll.u32 %v3290_v48, 16  ;;  %v3332_v3 = vld [vmem:[%s3211_s15 + $0x20] sm:$0xff]   ;;  %v3344_v6 = vld [vmem:[%s3211_s15 + $0x28] sm:$0xff]  }
  0x1a   : > { %897 = vmatprep.mubr.bf16.mxu0 %v3225_v23  ;;  %v573_v29 = vrot.slane %v489_v25, 1  ;;  %v488_v30 = vrot.slane %v486_v24, 7  ;;  %v575_v37 = vrot.slane %v496_v33, 1  ;;  %v495_v40 = vrot.slane %v493_v32, 7  ;;  %s2244_s11 = sshll.u32 %s4199_s6, 1  ;;  %v2987_v10 = vld [vmem:[%s4132_s3 + $0x60] sm:$0xff]  }
  0x1b   : > { %v507_v55 = vshrl.u32 %v3295_v50, 16  ;;  %v510_v56 = vshll.u32 %v3295_v50, 16  ;;  %v577_v57 = vrot.slane %v503_v52, 1  ;;  %v502_v63 = vrot.slane %v500_v51, 7  ;;  %s3361_s7 = sadd.s32 %s2244_s11, %s3173_s9 }
  0x1c   : > { %2481 = vmatpush3.bf16.msra.mxu0 %v2959_v14  ;;  %2721 = vmatpush3.bf16.msra.mxu1 %v2958_v13  ;;  %v574_v35 = vor.u32 %v573_v29, %v486_v24  ;;  %v491_v36 = vor.u32 %v489_v25, %v488_v30  ;;  %v576_v43 = vor.u32 %v575_v37, %v493_v32  ;;  %v514_v7 = vshrl.u32 %v3332_v3, 16  ;;  %s2246_s10 = sshll.u32 %s3361_s7, 2  ;;  %v2991_v25 = vld [vmem:[%s4132_s3 + $0x68] sm:$0xff]   ;;  %v3395_v30 = vld [vmem:[%s3211_s15 + $0x30] sm:$0xff]   ;;  %v2996_v37 = vld [vmem:[%s4132_s3 + $0x1d8] sm:$0xff]  }
  0x1d   : > { %2482 = vmatprep.subr.bf16.mxu0 %v2960_v15  ;;  %2722 = vmatprep.subr.bf16.mxu1 %v2961_v16  ;;  %v498_v49 = vor.u32 %v496_v33, %v495_v40  ;;  %v579_v59 = vrot.slane %v510_v56, 1  ;;  %v578_v61 = vor.u32 %v577_v57, %v500_v51  ;;  %v517_v8 = vshll.u32 %v3332_v3, 16  ;;  %v2988_v15 = vld [vmem:[%s4132_s3 + $0x1d0] sm:$0xff]   ;;  %v2992_v29 = vld [vmem:[%s4132_s3 + $0x28] sm:$0xff]   ;;  %v3404_v33 = vld [vmem:[%s3211_s15 + $0x38] sm:$0xff]   ;;  %s360_s30 = scalar_lea.vmem %s4130_s1, %s2246_s10 }
  0x1e   : > { %v3269_v41 = vsel %vm3240_vm4, %v574_v35, 0  ;;  %v3273_v42 = vsel %vm3252_vm5, 0, %v491_v36  ;;  %v3284_v46 = vsel %vm3240_vm4, %v576_v43, 0  ;;  %v505_v9 = vor.u32 %v503_v52, %v502_v63  ;;  %v2995_v36 = vld [vmem:[%s4132_s3 + $0x70] sm:$0xff]   ;;  %v414_v57 = vld [vmem:[%s360_s30 + $0x4] sm:$0xf] }
  0x1f   : > { %2728 = vmatprep.mubr.bf16.mxu1 %v3269_v41  ;;  %v3315_v58 = vsel %vm3252_vm5, 0, %v498_v49  ;;  %v580_v0 = vor.u32 %v579_v59, %v507_v55  ;;  %v3329_v2 = vsel %vm3240_vm4, %v578_v61, 0  ;;  %v509_v11 = vrot.slane %v507_v55, 7  ;;  %v2999_v55 = vld [vmem:[%s4132_s3 + $0x78] sm:$0xff]   ;;  %v3023_v51 = vld [vmem:[%s4132_s3 + $0x230] sm:$0xff]  }
  0x20   : > { %2483 = vmatpush3.bf16.msra.mxu0 %v2962_v17  ;;  %2723 = vmatpush3.bf16.msra.mxu1 %v2961_v16  ;;  %v521_v12 = vshrl.u32 %v3344_v6, 16  ;;  %v524_v13 = vshll.u32 %v3344_v6, 16  ;;  %v581_v14 = vrot.slane %v517_v8, 1  ;;  %v531_v35 = vshll.u32 %v3395_v30, 16  ;;  %s423_s27 = scalar_select %p420_p11, 1, 0 }
  0x21   : > { %2484 = vmatprep.subr.bf16.mxu0 %v2963_v18  ;;  %2724 = vmatprep.subr.bf16.mxu1 %v2964_v19  ;;  %v3338_v4 = vsel %vm3240_vm4, %v580_v0, 0  ;;  %v3367_v18 = vsel %vm3252_vm5, 0, %v505_v9  ;;  %v416_v40 = vstv %s3246_s8  ;;  %v3002_v0 = vld [vmem:[%s4132_s3 + $0x1e0] sm:$0xff]  }
  0x22   : > { %v583_v16 = vrot.slane %v524_v13, 1  ;;  %v582_v17 = vor.u32 %v581_v14, %v514_v7  ;;  %v585_v43 = vrot.slane %v531_v35, 1  ;;  %vm3429_vm6 = vcmp.eq.s32.totalorder %v416_v40, 1  ;;  %v3010_v40 = vld [vmem:[%s4132_s3 + $0x98] sm:$0xff]  }
  0x24   : > { %2485 = vmatpush3.bf16.msra.mxu0 %v2965_v20  ;;  %2725 = vmatpush3.bf16.msra.mxu1 %v2964_v19  ;;  %v2990_v19 = vld [vmem:[%s4132_s3 + $0x190] sm:$0xff]   ;;  %v512_v20 = vor.u32 %v510_v56, %v509_v11  ;;  %v3380_v24 = vsel %vm3240_vm4, %v582_v17, 0  ;;  %v413_v56 = vld [vmem:[%s360_s30] sm:$0xf]  ;;  %s2471_s30 = sadd.s32 8, %s3137_s29 }
  0x25   : > { %2486 = vmatprep.subr.bf16.mxu0 %v2966_v21  ;;  %2726 = vmatprep.subr.bf16.mxu1 %v2967_v22  ;;  %v584_v21 = vor.u32 %v583_v16, %v521_v12  ;;  %v418_v61 = vsel %vm3429_vm6, %v413_v56, 0  ;;  %p3595_p10 = scmp.lt.s32.totalorder %s2471_s30, 31 }
  0x26   : > { %v3401_v32 = vsel %vm3252_vm5, 0, %v512_v20  ;;  %v3008_v20 = vld [vmem:[%s4132_s3 + $0x1f0] sm:$0xff]  }
  0x27   : > { %s4201_s30 = smov (!%p3595_p10, %s2471_s30), 31 }
  0x28   : > { %2487 = vmatpush3.bf16.msra.mxu0 %v2968_v28  ;;  %2727 = vmatpush3.bf16.msra.mxu1 %v2967_v22  ;;  %v2989_v22 = vld [vmem:[%s4132_s3 + $0x20] sm:$0xff]   ;;  %v3389_v28 = vsel %vm3240_vm4, %v584_v21, 0  ;;  %s4203_s30 = smov (!%p3595_p10, %s4201_s30), 31 }
  0x29   : > { %2552 = vmatprep.subr.bf16.mxu1 %v2971_v34  ;;  %2632 = vmatprep.subr.bf16.mxu0 %v2972_v38  ;;  %v528_v34 = vshrl.u32 %v3395_v30, 16  ;;  %v535_v38 = vshrl.u32 %v3404_v33, 16  ;;  %s2251_s7 = sshll.u32 %s4203_s30, 1 }
  0x2a   : > { %s375_s15 = sadd.s32 %s2251_s7, %s3173_s9 }
  0x2b   : > { %898 = vmatmul.mubr.bf16.vlgmr.msra.gmra.mrb[0].mxu0 %v3273_v42  ;;  %2729 = vmatmul.mubr.bf16.vlgmr.msra.gmra.mrb[0].mxu1 %v3284_v46  ;;  %v586_v49 = vor.u32 %v585_v43, %v528_v34  ;;  %v537_v43 = vrot.slane %v535_v38, 7  ;;  %s2253_s18 = sshll.u32 %s375_s15, 2 }
  0x2c   : > { %2553 = vmatpush3.bf16.msra.mxu1 %v2973_v39  ;;  %2633 = vmatpush3.bf16.msra.mxu0 %v2974_v44  ;;  %v538_v39 = vshll.u32 %v3404_v33, 16  ;;  %v516_v44 = vrot.slane %v514_v7, 7  ;;  %v3003_v7 = vld [vmem:[%s4132_s3 + $0x1a0] sm:$0xff]   ;;  %s377_s8 = scalar_lea.vmem %s4131_s2, %s2253_s18 }
  0x2d   : > { %2554 = vmatprep.subr.bf16.mxu1 %v2975_v45  ;;  %905 = vmatprep.mubr.bf16.mxu0 %v3232_v26  ;;  %v422_v56 = vld [vmem:[%s377_s8 + $0x4] sm:$0xf] }
  0x2e   : > { %2634 = vmatprep.subr.bf16.mxu0 %v2980_v54  ;;  %2732 = vmatprep.mubr.bf16.mxu1 %v3329_v2  ;;  %v587_v45 = vrot.slane %v538_v39, 1  ;;  %v3440_v54 = vsel %vm3240_vm4, %v586_v49, 0  ;;  %v519_v63 = vor.u32 %v517_v8, %v516_v44  ;;  %v523_v8 = vrot.slane %v521_v12, 7  ;;  %v3006_v12 = vld [vmem:[%s4132_s3 + $0x1a8] sm:$0xff]  }
  0x2f   : > { %v3573_v49 = vld [vmem:[%s4132_s3 + $0x208] sm:$0xff]  }
  0x30   : > { %2555 = vmatpush3.bf16.msra.mxu1 %v2976_v47  ;;  %2635 = vmatpush3.bf16.msra.mxu0 %v2982_v60  ;;  %v2998_v47 = vld [vmem:[%s4132_s3 + $0x198] sm:$0xff]   ;;  %v588_v52 = vor.u32 %v587_v45, %v535_v38  ;;  %v3480_v11 = vsel %vm3252_vm5, 0, %v519_v63  ;;  %v526_v17 = vor.u32 %v524_v13, %v523_v8  ;;  %v3015_v38 = vld [vmem:[%s4132_s3 + $0xa8] sm:$0xff]  }
  0x31   : > { %2556 = vmatprep.subr.bf16.mxu1 %v2979_v53  ;;  %2636 = vmatprep.subr.bf16.mxu0 %v2988_v15  ;;  %v2997_v53 = vld [vmem:[%s4132_s3 + $0x30] sm:$0xff]   ;;  %v3000_v60 = vld [vmem:[%s4132_s3 + $0x38] sm:$0xff]   ;;  %v3005_v15 = vld [vmem:[%s4132_s3 + $0x1e8] sm:$0xff]  }
  0x32   : > { %v3449_v59 = vsel %vm3240_vm4, %v588_v52, 0  ;;  %v3510_v13 = vsel %vm3252_vm5, 0, %v526_v17 }
  0x33   : > { %906 = vmatmul.mubr.bf16.gmra.mrb[4].mxu0 %v3315_v58  ;;  %2733 = vmatmul.mubr.bf16.gmra.mrb[4].mxu1 %v3338_v4 }
  0x34   : > { %913 = vmatprep.mubr.bf16.mxu0 %v3290_v48  ;;  %2557 = vmatpush3.bf16.msra.mxu1 %v2981_v62  ;;  %v419_v62 = vsel %vm3429_vm6, %v414_v57, 0 }
  0x35   : > { %2558 = vmatprep.subr.bf16.mxu1 %v2983_v1  ;;  %2637 = vmatpush3.bf16.msra.mxu0 %v2990_v19  ;;  %v3465_v1 = vcombine.low %v418_v61, %v419_v62  ;;  %v3004_v19 = vld [vmem:[%s4132_s3 + $0x88] sm:$0xff]  }
  0x36   : > { %2736 = vmatprep.mubr.bf16.mxu1 %v3380_v24  ;;  %2638 = vmatprep.subr.bf16.mxu0 %v2996_v37  ;;  %v3526_v37 = vld [vmem:[%s4132_s3 + $0x200] sm:$0xff]  }
  0x37   : > { %v479_v9 = vshrl.u32 %v3465_v1, 16 }
  0x38   : > { %2559 = vmatpush3.bf16.msra.mxu1 %v2984_v5  ;;  %v3001_v5 = vld [vmem:[%s4132_s3 + $0x80] sm:$0xff]  }
  0x39   : > { %2560 = vmatprep.subr.bf16.mxu1 %v2987_v10  ;;  %2639 = vmatpush3.bf16.msra.mxu0 %v2998_v47  ;;  %v482_v10 = vshll.u32 %v3465_v1, 16  ;;  %v481_v14 = vrot.slane %v479_v9, 7  ;;  %v3017_v47 = vld [vmem:[%s4132_s3 + $0xb0] sm:$0xff]  }
  0x3a   : > { %2640 = vmatprep.subr.bf16.mxu0 %v3002_v0 }
  0x3b   : > { %914 = vmatmul.mubr.bf16.gmra.mrb[8].mxu0 %v3367_v18  ;;  %2737 = vmatmul.mubr.bf16.gmra.mrb[8].mxu1 %v3389_v28  ;;  %v484_v16 = vor.u32 %v482_v10, %v481_v14 }
  0x3c   : > { %921 = vmatprep.mubr.bf16.mxu0 %v3295_v50  ;;  %2561 = vmatpush3.bf16.msra.mxu1 %v2989_v22  ;;  %v3009_v22 = vld [vmem:[%s4132_s3 + $0x1b0] sm:$0xff]  }
  0x3d   : > { %2562 = vmatprep.subr.bf16.mxu1 %v2991_v25  ;;  %2740 = vmatprep.mubr.bf16.mxu1 %v3440_v54  ;;  %v561_v21 = vsel %vm3252_vm5, 0, %v484_v16  ;;  %v3011_v25 = vld [vmem:[%s4132_s3 + $0x1f8] sm:$0xff]  }
  0x3e   : > { %2641 = vmatpush3.bf16.msra.mxu0 %v3003_v7 }
  0x3f   : > { %2642 = vmatprep.subr.bf16.mxu0 %v3005_v15 }
  0x40   : > { %2563 = vmatpush3.bf16.msra.mxu1 %v2992_v29  ;;  %v530_v29 = vrot.slane %v528_v34, 7 }
  0x41   : > { %2564 = vmatprep.subr.bf16.mxu1 %v2995_v36  ;;  %v3007_v36 = vld [vmem:[%s4132_s3 + $0x90] sm:$0xff]  }
  0x42   : > { %2643 = vmatpush3.bf16.msra.mxu0 %v3006_v12  ;;  %v533_v34 = vor.u32 %v531_v35, %v530_v29  ;;  %v3013_v35 = vld [vmem:[%s4132_s3 + $0xa0] sm:$0xff]  }
  0x43   : > { %922 = vmatmul.mubr.bf16.gmra.mrb[12].mxu0 %v3401_v32  ;;  %2741 = vmatmul.mubr.bf16.gmra.mrb[12].mxu1 %v3449_v59 }
  0x44   : > { %929 = vmatprep.mubr.bf16.mxu0 %v3332_v3  ;;  %2565 = vmatpush3.bf16.msra.mxu1 %v2997_v53  ;;  %v3542_v44 = vsel %vm3252_vm5, 0, %v533_v34  ;;  %v424_v53 = vstv %s423_s27 }
  0x45   : > { %2566 = vmatprep.subr.bf16.mxu1 %v2999_v55  ;;  %1235 = vmatprep.mubr.bf16.mxu1 %v3465_v1  ;;  %v421_v55 = vld [vmem:[%s377_s8] sm:$0xf]  ;;  %vm425_vm7 = vcmp.eq.s32.totalorder %v424_v53, 1 }
  0x46   : > { %2644 = vmatprep.subr.bf16.mxu0 %v3008_v20  ;;  %v427_v57 = vsel %vm425_vm7, %v422_v56, 0 }
  0x47   : > { %2645 = vmatpush3.bf16.msra.mxu0 %v3009_v22 }
  0x48   : > { %2567 = vmatpush3.bf16.msra.mxu1 %v3000_v60  ;;  %2646 = vmatprep.subr.bf16.mxu0 %v3011_v25 }
  0x49   : > { %2744 = vmatprep.subr.bf16.mxu1 %v3001_v5 }
  0x4b   : > { %930 = vmatmul.mubr.bf16.gmra.mrb[16].mxu0 %v3480_v11  ;;  %1236 = vmatmul.mubr.bf16.vlgmr.msra.gmra.mrb[16].mxu1 %v561_v21 }
  0x4c   : > { %937 = vmatprep.mubr.bf16.mxu0 %v3344_v6  ;;  %2745 = vmatpush3.bf16.msra.mxu1 %v3001_v5 }
  0x4d   : > { %1243 = vmatprep.mubr.bf16.mxu1 %v3225_v23  ;;  %2746 = vmatprep.subr.bf16.mxu1 %v3004_v19  ;;  %v3012_v23 = vld [vmem:[%s4132_s3 + $0x1b8] sm:$0xff]  }
  0x4e   : > { %2647 = vmatpush3.bf16.msra.mxu0 %v3012_v23 }
  0x4f   : > { %2776 = vmatprep.subr.bf16.mxu0 %v3526_v37 }
  0x50   : > { %2747 = vmatpush3.bf16.msra.mxu1 %v3004_v19 }
  0x51   : > { %2748 = vmatprep.subr.bf16.mxu1 %v3007_v36 }
  0x53   : > { %938 = vmatmul.mubr.bf16.gmra.mrb[20].mxu0 %v3510_v13  ;;  %1244 = vmatmul.mubr.bf16.gmra.mrb[20].mxu1 %v3273_v42  ;;  %v540_v42 = vor.u32 %v538_v39, %v537_v43  ;;  %v3019_v39 = vld [vmem:[%s4132_s3 + $0xb8] sm:$0xff]  }
  0x54   : > { %945 = vmatprep.mubr.bf16.mxu0 %v3395_v30  ;;  %1251 = vmatprep.mubr.bf16.mxu1 %v3232_v26 }
  0x55   : > { %2749 = vmatpush3.bf16.msra.mxu1 %v3007_v36  ;;  %v3558_v45 = vsel %vm3252_vm5, 0, %v540_v42 }
  0x56   : > { %2750 = vmatprep.subr.bf16.mxu1 %v3010_v40 }
  0x59   : > { %2751 = vmatpush3.bf16.msra.mxu1 %v3010_v40 }
  0x5a   : > { %2752 = vmatprep.subr.bf16.mxu1 %v3013_v35 }
  0x5b   : > { %946 = vmatmul.mubr.bf16.gmra.mrb[24].mxu0 %v3542_v44  ;;  %1252 = vmatmul.mubr.bf16.gmra.mrb[24].mxu1 %v3315_v58 }
  0x5c   : > { %953 = vmatprep.mubr.bf16.mxu0 %v3404_v33  ;;  %1259 = vmatprep.mubr.bf16.mxu1 %v3290_v48 }
  0x5d   : > { %2753 = vmatpush3.bf16.msra.mxu1 %v3013_v35 }
  0x5e   : > { %2754 = vmatprep.subr.bf16.mxu1 %v3015_v38 }
  0x61   : > { %2755 = vmatpush3.bf16.msra.mxu1 %v3015_v38 }
  0x62   : > { %2756 = vmatprep.subr.bf16.mxu1 %v3017_v47 }
  0x63   : > { %954 = vmatmul.mubr.bf16.gmra.mrb[28].mxu0 %v3558_v45  ;;  %1260 = vmatmul.mubr.bf16.gmra.mrb[28].mxu1 %v3367_v18 }
  0x64   : > { %1622 = vmatprep.mubr.bf16.mxu0 %v3232_v26  ;;  %1267 = vmatprep.mubr.bf16.mxu1 %v3295_v50  ;;  %v3582_v26 = vld [vmem:[%s4132_s3 + $0x210] sm:$0xff]  }
  0x65   : > { %2757 = vmatpush3.bf16.msra.mxu1 %v3017_v47 }
  0x66   : > { %2758 = vmatprep.subr.bf16.mxu1 %v3019_v39 }
  0x69   : > { %2759 = vmatpush3.bf16.msra.mxu1 %v3019_v39 }
  0x6a   : > { %2808 = vmatprep.subr.bf16.mxu1 %v3526_v37 }
  0x6b   : > { %1623 = vmatmul.mubr.bf16.vlgmr.msra.gmra.mrb[32].mxu0 %v3315_v58  ;;  %1268 = vmatmul.mubr.bf16.gmra.mrb[32].mxu1 %v3401_v32  ;;  %v3606_v58 = vld [vmem:[%s4132_s3 + $0x220] sm:$0xff]  }
  0x6c   : > { %2777 = vmatpush3.bf16.msra.mxu0 %v3526_v37  ;;  %1630 = vmatprep.mubr.bf16.mxu0 %v3290_v48  ;;  %v3593_v48 = vld [vmem:[%s4132_s3 + $0x218] sm:$0xff]  }
  0x6d   : > { %2778 = vmatprep.subr.bf16.mxu0 %v3573_v49  ;;  %1275 = vmatprep.mubr.bf16.mxu1 %v3332_v3 }
  0x70   : > { %2779 = vmatpush3.bf16.msra.mxu0 %v3573_v49 }
  0x71   : > { %2780 = vmatprep.subr.bf16.mxu0 %v3582_v26 }
  0x73   : > { %1631 = vmatmul.mubr.bf16.gmra.mrb[36].mxu0 %v3367_v18  ;;  %1276 = vmatmul.mubr.bf16.gmra.mrb[36].mxu1 %v3480_v11  ;;  %v571_v18 = vrot.slane %v482_v10, 1 }
  0x74   : > { %1638 = vmatprep.mubr.bf16.mxu0 %v3295_v50  ;;  %2781 = vmatpush3.bf16.msra.mxu0 %v3582_v26  ;;  %v3022_v50 = vld [vmem:[%s4132_s3 + $0x228] sm:$0xff]  }
  0x75   : > { %2782 = vmatprep.subr.bf16.mxu0 %v3593_v48  ;;  %1283 = vmatprep.mubr.bf16.mxu1 %v3344_v6 }
  0x78   : > { %2783 = vmatpush3.bf16.msra.mxu0 %v3593_v48 }
  0x79   : > { %2784 = vmatprep.subr.bf16.mxu0 %v3606_v58 }
  0x7b   : > { %1639 = vmatmul.mubr.bf16.gmra.mrb[40].mxu0 %v3401_v32  ;;  %1284 = vmatmul.mubr.bf16.gmra.mrb[40].mxu1 %v3510_v13  ;;  %v572_v32 = vor.u32 %v571_v18, %v479_v9 }
  0x7c   : > { %1646 = vmatprep.mubr.bf16.mxu0 %v3332_v3  ;;  %2785 = vmatpush3.bf16.msra.mxu0 %v3606_v58  ;;  %v3024_v3 = vld [vmem:[%s4132_s3 + $0x238] sm:$0xff]  }
  0x7d   : > { %2786 = vmatprep.subr.bf16.mxu0 %v3022_v50  ;;  %1291 = vmatprep.mubr.bf16.mxu1 %v3395_v30  ;;  %v604_v52 = vsel %vm3240_vm4, %v572_v32, 0 }
  0x80   : > { %2787 = vmatpush3.bf16.msra.mxu0 %v3022_v50 }
  0x81   : > { %2788 = vmatprep.subr.bf16.mxu0 %v3023_v51 }
  0x83   : > { %1647 = vmatmul.mubr.bf16.gmra.mrb[44].mxu0 %v3480_v11  ;;  %1292 = vmatmul.mubr.bf16.gmra.mrb[44].mxu1 %v3542_v44 }
  0x84   : > { %1654 = vmatprep.mubr.bf16.mxu0 %v3344_v6  ;;  %2789 = vmatpush3.bf16.msra.mxu0 %v3023_v51  ;;  %v426_v6 = vsel %vm425_vm7, %v421_v55, 0 }
  0x85   : > { %2790 = vmatprep.subr.bf16.mxu0 %v3024_v3  ;;  %2760 = vmatprep.mubr.bf16.mxu1 %v604_v52  ;;  %v2267_v60 = vcombine.low %v426_v6, %v427_v57 }
  0x87   : > { %v545_v61 = vshll.u32 %v2267_v60, 16 }
  0x88   : > { %2791 = vmatpush3.bf16.msra.mxu0 %v3024_v3 }
  0x89   : > { %v589_v63 = vrot.slane %v545_v61, 1 }
  0x8b   : > { %1655 = vmatmul.mubr.bf16.gmra.mrb[48].mxu0 %v3510_v13  ;;  %2761 = vmatmul.mubr.bf16.vlgmr.msra.gmra.mrb[0].mxu1 %v3269_v41 }
  0x8c   : > { %1662 = vmatprep.mubr.bf16.mxu0 %v3395_v30  ;;  %2816 = vmatpush3.bf16.msra.mxu1 %v3526_v37  ;;  %v542_v30 = vshrl.u32 %v2267_v60, 16 }
  0x8d   : > { %2764 = vmatprep.mubr.bf16.mxu1 %v3284_v46  ;;  %2809 = vmatprep.subr.bf16.mxu1 %v3573_v49 }
  0x8e   : > { %v544_v41 = vrot.slane %v542_v30, 7  ;;  %v590_v31 = vor.u32 %v589_v63, %v542_v30 }
  0x90   : > { %2817 = vmatpush3.bf16.msra.mxu1 %v3573_v49  ;;  %v547_v62 = vor.u32 %v545_v61, %v544_v41 }
  0x91   : > { %2810 = vmatprep.subr.bf16.mxu1 %v3582_v26 }
  0x93   : > { %1663 = vmatmul.mubr.bf16.gmra.mrb[52].mxu0 %v3542_v44  ;;  %2765 = vmatmul.mubr.bf16.gmra.mrb[4].mxu1 %v3329_v2 }
  0x94   : > { %1670 = vmatprep.mubr.bf16.mxu0 %v3404_v33  ;;  %2818 = vmatpush3.bf16.msra.mxu1 %v3582_v26  ;;  %v570_v33 = vsel %vm3252_vm5, 0, %v547_v62 }
  0x95   : > { %2768 = vmatprep.mubr.bf16.mxu1 %v3338_v4  ;;  %2811 = vmatprep.subr.bf16.mxu1 %v3593_v48 }
  0x98   : > { %2819 = vmatpush3.bf16.msra.mxu1 %v3593_v48 }
  0x99   : > { %2812 = vmatprep.subr.bf16.mxu1 %v3606_v58 }
  0x9b   : > { %1671 = vmatmul.mubr.bf16.gmra.mrb[56].mxu0 %v3558_v45  ;;  %2769 = vmatmul.mubr.bf16.gmra.mrb[8].mxu1 %v3380_v24 }
  0x9c   : > { %1678 = vmatprep.mubr.bf16.mxu0 %v2267_v60  ;;  %2820 = vmatpush3.bf16.msra.mxu1 %v3606_v58 }
  0x9d   : > { %2772 = vmatprep.mubr.bf16.mxu1 %v3389_v28  ;;  %2813 = vmatprep.subr.bf16.mxu1 %v3022_v50 }
  0xa0   : > { %2821 = vmatpush3.bf16.msra.mxu1 %v3022_v50 }
  0xa1   : > { %2814 = vmatprep.subr.bf16.mxu1 %v3023_v51 }
  0xa3   : > { %1679 = vmatmul.mubr.bf16.gmra.mrb[60].mxu0 %v570_v33  ;;  %2773 = vmatmul.mubr.bf16.gmra.mrb[12].mxu1 %v3440_v54 }
  0xa4   : > { %2792 = vmatprep.mubr.bf16.mxu0 %v3284_v46  ;;  %2822 = vmatpush3.bf16.msra.mxu1 %v3023_v51  ;;  %v613_v46 = vsel %vm3240_vm4, %v590_v31, 0 }
  0xa5   : > { %2800 = vmatprep.mubr.bf16.mxu1 %v3389_v28  ;;  %2815 = vmatprep.subr.bf16.mxu1 %v3024_v3 }
  0xa8   : > { %2823 = vmatpush3.bf16.msra.mxu1 %v3024_v3 }
  0xab   : > { %2793 = vmatmul.mubr.bf16.vlgmr.msra.gmra.mrb[64].mxu0 %v3329_v2  ;;  %2801 = vmatmul.mubr.bf16.vlgmr.msra.gmra.mrb[8].mxu1 %v3440_v54 }
  0xac   : > { %2796 = vmatprep.mubr.bf16.mxu0 %v3338_v4  ;;  %2804 = vmatprep.mubr.bf16.mxu1 %v3449_v59 }
  0xb3   : > { %2797 = vmatmul.mubr.bf16.gmra.mrb[68].mxu0 %v3380_v24  ;;  %2805 = vmatmul.mubr.bf16.gmra.mrb[12].mxu1 %v613_v46 }
  0xfe   : > { %v2488_v0 = vpop.f32.mrb[0].mxu0 }
  0xff   : > { %v2489_v28 = vpop.f32.mrb[1].mxu0 }
 0x100   : > { %v2490_v1 = vadd.f32 %v2489_v28, %v2488_v0  ;;  %v2491_v5 = vpop.f32.mrb[2].mxu0 }
 0x101   : > { %v2492_v7 = vpop.f32.mrb[3].mxu0 }
 0x102   : > { %v2493_v2 = vadd.f32 %v2492_v7, %v2491_v5 }
 0x106   : > { %v2494_v8 = vpop.f32.mrb[4].mxu0 }
 0x107   : > { %v2495_v9 = vpop.f32.mrb[5].mxu0 }
 0x108   : > { %v2496_v4 = vadd.f32 %v2495_v9, %v2494_v8  ;;  %v2497_v10 = vpop.f32.mrb[6].mxu0 }
 0x109   : > { %v2498_v54 = vpop.f32.mrb[7].mxu0 }
 0x10a   : > { %v2499_v11 = vadd.f32 %v2498_v54, %v2497_v10 }
 0x10e   : > { %v2500_v59 = vpop.f32.mrb[8].mxu0 }
 0x10f   : > { %v2501_v14 = vpop.f32.mrb[9].mxu0 }
 0x110   : > { %v2502_v15 = vadd.f32 %v2501_v14, %v2500_v59  ;;  %v2503_v24 = vpop.f32.mrb[10].mxu0 }
 0x111   : > { %v2504_v12 = vpop.f32.mrb[11].mxu0 }
 0x112   : > { %v2505_v27 = vadd.f32 %v2504_v12, %v2503_v24 }
 0x116   : > { %v2506_v16 = vpop.f32.mrb[12].mxu0 }
 0x117   : > { %v2507_v17 = vpop.f32.mrb[13].mxu0 }
 0x118   : > { %v2508_v19 = vadd.f32 %v2507_v17, %v2506_v16  ;;  %v2509_v20 = vpop.f32.mrb[14].mxu0 }
 0x119   : > { %v2510_v21 = vpop.f32.mrb[15].mxu0 }
 0x11a   : > { %v2511_v22 = vadd.f32 %v2510_v21, %v2509_v20 }
 0x11e   : > { %v2512_v13 = vpop.f32.mrb[16].mxu0  ;;  %v2568_v23 = vpop.f32.mrb[16].mxu1 }
 0x11f   : > { %v2513_v25 = vpop.f32.mrb[17].mxu0  ;;  %v2569_v34 = vpop.f32.mrb[17].mxu1 }
 0x120   : > { %v3676_v29 = vadd.f32 %v2513_v25, %v2512_v13  ;;  %v2515_v36 = vpop.f32.mrb[18].mxu0  ;;  %v2570_v43 = vadd.f32 %v2569_v34, %v2568_v23  ;;  %v2571_v44 = vpop.f32.mrb[18].mxu1 }
 0x121   : > { %v2516_v37 = vpop.f32.mrb[19].mxu0  ;;  %v2572_v35 = vpop.f32.mrb[19].mxu1 }
 0x122   : > { %v3678_v40 = vadd.f32 %v2516_v37, %v2515_v36  ;;  %v2573_v42 = vadd.f32 %v2572_v35, %v2571_v44  ;;  %v3680_v38 = vadd.f32 %v2570_v43, %v2490_v1 }
 0x124   : > { %v3682_v39 = vadd.f32 %v2573_v42, %v2493_v2 }
 0x126   : > { %v2518_v45 = vpop.f32.mrb[20].mxu0  ;;  %v2574_v48 = vpop.f32.mrb[20].mxu1 }
 0x127   : > { %v2519_v47 = vpop.f32.mrb[21].mxu0  ;;  %v2575_v50 = vpop.f32.mrb[21].mxu1 }
 0x128   : > { %v3684_v49 = vadd.f32 %v2519_v47, %v2518_v45  ;;  %v2521_v26 = vpop.f32.mrb[22].mxu0  ;;  %v2576_v51 = vadd.f32 %v2575_v50, %v2574_v48  ;;  %v2577_v32 = vpop.f32.mrb[22].mxu1 }
 0x129   : > { %v2522_v58 = vpop.f32.mrb[23].mxu0  ;;  %v2578_v3 = vpop.f32.mrb[23].mxu1 }
 0x12a   : > { %v3686_v18 = vadd.f32 %v2522_v58, %v2521_v26  ;;  %v2579_v52 = vadd.f32 %v2578_v3, %v2577_v32  ;;  %v3688_v53 = vadd.f32 %v2576_v51, %v2496_v4 }
 0x12c   : > { %v3690_v6 = vadd.f32 %v2579_v52, %v2499_v11 }
 0x12e   : > { %v2524_v55 = vpop.f32.mrb[24].mxu0  ;;  %v2580_v30 = vpop.f32.mrb[24].mxu1 }
 0x12f   : > { %v2525_v56 = vpop.f32.mrb[25].mxu0  ;;  %v2581_v61 = vpop.f32.mrb[25].mxu1 }
 0x130   : > { %v3692_v57 = vadd.f32 %v2525_v56, %v2524_v55  ;;  %v2527_v60 = vpop.f32.mrb[26].mxu0  ;;  %v2582_v33 = vadd.f32 %v2581_v61, %v2580_v30  ;;  %v2583_v63 = vpop.f32.mrb[26].mxu1 }
 0x131   : > { %v2528_v41 = vpop.f32.mrb[27].mxu0  ;;  %v2584_v31 = vpop.f32.mrb[27].mxu1 }
 0x132   : > { %v3694_v62 = vadd.f32 %v2528_v41, %v2527_v60  ;;  %v2585_v46 = vadd.f32 %v2584_v31, %v2583_v63  ;;  %v3696_v0 = vadd.f32 %v2582_v33, %v2502_v15 }
 0x134   : > { %v3698_v5 = vadd.f32 %v2585_v46, %v2505_v27 }
 0x136   : > { %v2530_v28 = vpop.f32.mrb[28].mxu0  ;;  %v2586_v8 = vpop.f32.mrb[28].mxu1 }
 0x137   : > { %v2531_v1 = vpop.f32.mrb[29].mxu0  ;;  %v2587_v4 = vpop.f32.mrb[29].mxu1 }
 0x138   : > { %v3700_v7 = vadd.f32 %v2531_v1, %v2530_v28  ;;  %v2533_v2 = vpop.f32.mrb[30].mxu0  ;;  %v2588_v54 = vadd.f32 %v2587_v4, %v2586_v8  ;;  %v2589_v11 = vpop.f32.mrb[30].mxu1 }
 0x139   : > { %v2534_v9 = vpop.f32.mrb[31].mxu0  ;;  %v2590_v59 = vpop.f32.mrb[31].mxu1 }
 0x13a   : > { %v3702_v10 = vadd.f32 %v2534_v9, %v2533_v2  ;;  %v2591_v14 = vadd.f32 %v2590_v59, %v2589_v11  ;;  %v3704_v24 = vadd.f32 %v2588_v54, %v2508_v19 }
 0x13c   : > { %v3706_v16 = vadd.f32 %v2591_v14, %v2511_v22 }
 0x13e   : > { %v2648_v15 = vpop.f32.mrb[32].mxu0  ;;  %v2592_v20 = vpop.f32.mrb[32].mxu1 }
 0x13f   : > { %v2649_v12 = vpop.f32.mrb[33].mxu0  ;;  %v2593_v13 = vpop.f32.mrb[33].mxu1 }
 0x140   : > { %v3708_v27 = vadd.f32 %v2649_v12, %v2648_v15  ;;  %v2651_v17 = vpop.f32.mrb[34].mxu0  ;;  %v2594_v36 = vadd.f32 %v2593_v13, %v2592_v20  ;;  %v2595_v23 = vpop.f32.mrb[34].mxu1  ;;  %v1847_v15 = vlaneseq }
 0x141   : > { %v2652_v21 = vpop.f32.mrb[35].mxu0  ;;  %v2596_v37 = vpop.f32.mrb[35].mxu1 }
 0x142   : > { %v3710_v25 = vadd.f32 %v2652_v21, %v2651_v17  ;;  %v2859_v34 = vadd.f32 %v2594_v36, %v3676_v29  ;;  %v2597_v43 = vadd.f32 %v2596_v37, %v2595_v23  ;;  %v1848_v13 = vshrl.u32 %v1847_v15, 7 }
 0x144   : > { %v2865_v44 = vadd.f32 %v2597_v43, %v3678_v40 }
 0x146   : > { %v2654_v19 = vpop.f32.mrb[36].mxu0  ;;  %v2598_v45 = vpop.f32.mrb[36].mxu1 }
 0x147   : > { %v2655_v35 = vpop.f32.mrb[37].mxu0  ;;  %v2599_v26 = vpop.f32.mrb[37].mxu1 }
 0x148   : > { %v2656_v22 = vadd.f32 %v2655_v35, %v2654_v19  ;;  %v2657_v42 = vpop.f32.mrb[38].mxu0  ;;  %v2600_v58 = vadd.f32 %v2599_v26, %v2598_v45  ;;  %v2601_v50 = vpop.f32.mrb[38].mxu1  ;;  %v3737_v19 = vstv %s3137_s29 }
 0x149   : > { %v2658_v47 = vpop.f32.mrb[39].mxu0  ;;  %v2602_v51 = vpop.f32.mrb[39].mxu1  ;;  %vm1861_vm14 = vcmp.lt.s32.totalorder %v3737_v19, 18 }
 0x14a   : > { %v2659_v48 = vadd.f32 %v2658_v47, %v2657_v42  ;;  %v3715_v32 = vadd.f32 %v2600_v58, %v3684_v49  ;;  %v2603_v3 = vadd.f32 %v2602_v51, %v2601_v50  ;;  %v3743_v58 = vadd.s32 8, %v1848_v13  ;;  %vm3828_vm4 = vmpackc.low %vm1861_vm14, %vm1861_vm14 }
 0x14c   : > { %v3718_v29 = vadd.f32 %v2603_v3, %v3686_v18  ;;  %v1854_v3 = vadd.s32 1, %v3737_v19  ;;  %vm1851_vm8 = vcmp.lt.s32.totalorder %v3743_v58, 12 }
 0x14d   : > { %vm3815_vm1 = vmand %vm1851_vm8, %vm1861_vm14 }
 0x14e   : > { %v2660_v52 = vpop.f32.mrb[40].mxu0  ;;  %v2604_v60 = vpop.f32.mrb[40].mxu1  ;;  %vm1862_vm9 = vcmp.lt.s32.totalorder %v1854_v3, 18  ;;  %vm1938_vm5 = vmpackc.low %vm3815_vm1, %vm3815_vm1 }
 0x14f   : > { %v2661_v55 = vpop.f32.mrb[41].mxu0  ;;  %v2605_v41 = vpop.f32.mrb[41].mxu1  ;;  %vm3770_vm10 = vmand %vm1851_vm8, %vm1862_vm9 }
 0x150   : > { %v3720_v40 = vadd.f32 %v2661_v55, %v2660_v52  ;;  %v2663_v56 = vpop.f32.mrb[42].mxu0  ;;  %v2606_v33 = vadd.f32 %v2605_v41, %v2604_v60  ;;  %v2607_v63 = vpop.f32.mrb[42].mxu1  ;;  %vm3783_vm12 = vmpackc.low %vm1862_vm9, %vm1862_vm9 }
 0x151   : > { %v2664_v30 = vpop.f32.mrb[43].mxu0  ;;  %v2608_v31 = vpop.f32.mrb[43].mxu1  ;;  %vm1940_vm13 = vmpackc.low %vm3770_vm10, %vm3770_vm10 }
 0x152   : > { %v3722_v61 = vadd.f32 %v2664_v30, %v2663_v56  ;;  %v3725_v49 = vadd.f32 %v2606_v33, %v3692_v57  ;;  %v2609_v46 = vadd.f32 %v2608_v31, %v2607_v63 }
 0x154   : > { %v3728_v18 = vadd.f32 %v2609_v46, %v3694_v62 }
 0x156   : > { %v2666_v28 = vpop.f32.mrb[44].mxu0  ;;  %v2610_v9 = vpop.f32.mrb[44].mxu1 }
 0x157   : > { %v2667_v1 = vpop.f32.mrb[45].mxu0  ;;  %v2611_v54 = vpop.f32.mrb[45].mxu1 }
 0x158   : > { %v2668_v2 = vadd.f32 %v2667_v1, %v2666_v28  ;;  %v2669_v8 = vpop.f32.mrb[46].mxu0  ;;  %v2612_v59 = vadd.f32 %v2611_v54, %v2610_v9  ;;  %v2613_v14 = vpop.f32.mrb[46].mxu1 }
 0x159   : > { %v2670_v4 = vpop.f32.mrb[47].mxu0  ;;  %v2614_v12 = vpop.f32.mrb[47].mxu1 }
 0x15a   : > { %v2671_v11 = vadd.f32 %v2670_v4, %v2669_v8  ;;  %v3731_v57 = vadd.f32 %v2612_v59, %v3700_v7  ;;  %v2615_v17 = vadd.f32 %v2614_v12, %v2613_v14  ;;  %v1856_v14 = vadd.s32 3, %v3737_v19 }
 0x15c   : > { %v3734_v62 = vadd.f32 %v2615_v17, %v3702_v10  ;;  %vm1864_vm6 = vcmp.lt.s32.totalorder %v1856_v14, 18 }
 0x15e   : > { %v2672_v20 = vpop.f32.mrb[48].mxu0  ;;  %v2762_v37 = vpop.f32.mrb[0].mxu1 }
 0x15f   : > { %v2673_v21 = vpop.f32.mrb[49].mxu0  ;;  %v2825_v35 = vadd.f32 %v3688_v53, %v2762_v37  ;;  %v1334_v42 = vpop.f32.mrb[1].mxu1 }
 0x160   : > { %v2674_v36 = vadd.f32 %v2673_v21, %v2672_v20  ;;  %v2675_v23 = vpop.f32.mrb[50].mxu0  ;;  %v2829_v7 = vadd.f32 %v3680_v38, %v1334_v42  ;;  %v2763_v26 = vpop.f32.mrb[2].mxu1  ;;  %v1860_v20 = vadd.s32 7, %v3737_v19  ;;  %v3065_v42 = vmov 0  }
 0x161   : > { %v2676_v43 = vpop.f32.mrb[51].mxu0  ;;  %v2833_v10 = vadd.f32 %v3690_v6, %v2763_v26  ;;  %v1337_v50 = vpop.f32.mrb[3].mxu1  ;;  %v3746_v51 = vadd.f32 %v2825_v35, %v2656_v22  ;;  %v1956_v26 = vsel %vm1940_vm13, 65537, %v3065_v42  ;;  %v1954_v3 = vsel %vm1938_vm5, 65537, %v3065_v42 }
 0x162   : > { %v2677_v45 = vadd.f32 %v2676_v43, %v2675_v23  ;;  %v3740_v47 = vadd.f32 %v2859_v34, %v2674_v36  ;;  %v2837_v53 = vadd.f32 %v3682_v39, %v1337_v50  ;;  %v3753_v55 = vadd.f32 %v2829_v7, %v3708_v27 }
 0x163   : > { %v3755_v56 = vadd.f32 %v2833_v10, %v2659_v48  ;;  %v1855_v23 = vadd.s32 2, %v3737_v19  ;;  %v1953_v50 = vsel %vm3828_vm4, 65537, %v3065_v42 }
 0x164   : > { %v3749_v52 = vadd.f32 %v2865_v44, %v2677_v45  ;;  %v3758_v60 = vadd.f32 %v2837_v53, %v3710_v25  ;;  %v1858_v44 = vadd.s32 5, %v3737_v19  ;;  %v1955_v45 = vsel %vm3783_vm12, 65537, %v3065_v42  ;;  %vm3883_vm12 = vmpackc.low %vm1864_vm6, %vm1864_vm6 }
 0x165   : > { %vm1863_vm13 = vcmp.lt.s32.totalorder %v1855_v23, 18 }
 0x166   : > { %v2678_v34 = vpop.f32.mrb[52].mxu0  ;;  %v2766_v22 = vpop.f32.mrb[4].mxu1  ;;  %vm1866_vm11 = vcmp.lt.s32.totalorder %v1858_v44, 18  ;;  %vm3923_vm1 = vmand %vm1851_vm8, %vm1863_vm13 }
 0x167   : > { %v2679_v38 = vpop.f32.mrb[53].mxu0  ;;  %v2841_v39 = vadd.f32 %v3704_v24, %v2766_v22  ;;  %v1350_v27 = vpop.f32.mrb[5].mxu1  ;;  %vm3799_vm15 = vmand %vm1851_vm8, %vm1866_vm11 }
 0x168   : > { %v2680_v6 = vadd.f32 %v2679_v38, %v2678_v34  ;;  %v2681_v30 = vpop.f32.mrb[54].mxu0  ;;  %v2845_v63 = vadd.f32 %v3696_v0, %v1350_v27  ;;  %v2767_v25 = vpop.f32.mrb[6].mxu1  ;;  %vm3806_vm0 = vmpackc.low %vm1866_vm11, %vm1866_vm11 }
 0x169   : > { %v2682_v41 = vpop.f32.mrb[55].mxu0  ;;  %v2849_v46 = vadd.f32 %v3706_v16, %v2767_v25  ;;  %v1353_v28 = vpop.f32.mrb[7].mxu1  ;;  %v3778_v1 = vadd.f32 %v2841_v39, %v2668_v2  ;;  %v1857_v16 = vadd.s32 4, %v3737_v19  ;;  %vm1948_vm2 = vmpackc.low %vm3799_vm15, %vm3799_vm15  ;;  %v1963_v10 = vsel %vm3806_vm0, 65537, %v3065_v42 }
 0x16a   : > { %v2683_v33 = vadd.f32 %v2682_v41, %v2681_v30  ;;  %v3764_v48 = vadd.f32 %v3715_v32, %v2680_v6  ;;  %v2853_v32 = vadd.f32 %v3698_v5, %v1353_v28  ;;  %v3788_v8 = vadd.f32 %v2845_v63, %v3720_v40  ;;  %vm3853_vm11 = vmand %vm1851_vm8, %vm1864_vm6 }
 0x16b   : > { %vm1865_vm3 = vcmp.lt.s32.totalorder %v1857_v16, 18  ;;  %v1964_v38 = vsel %vm1948_vm2, 65537, %v3065_v42  ;;  %vm1944_vm10 = vmpackc.low %vm3853_vm11, %vm3853_vm11  ;;  %v2438_v41 = vcombine.low %v1953_v50, %v1954_v3 }
 0x16c   : > { %v3776_v24 = vadd.f32 %v3718_v29, %v2683_v33  ;;  %v3795_v29 = vadd.f32 %v2849_v46, %v2671_v11  ;;  %v3804_v40 = vadd.f32 %v2853_v32, %v3722_v61  ;;  %vm3841_vm7 = vmand %vm1851_vm8, %vm1865_vm3  ;;  %v1859_v33 = vadd.s32 6, %v3737_v19 }
 0x16d   : > { %vm3845_vm9 = vmpackc.low %vm1865_vm3, %vm1865_vm3  ;;  %vm1868_vm3 = vcmp.lt.s32.totalorder %v1860_v20, 18  ;;  %v2443_v63 = vcombine.low %v1963_v10, %v1964_v38  ;;  %v3939_v32 = vsel %vm3883_vm12, 65537, %v3065_v42  ;;  %v3947_v0 = vsel %vm1944_vm10, 65537, %v3065_v42 }
 0x16e   : > { %v2684_v9 = vpop.f32.mrb[56].mxu0  ;;  %vm1946_vm14 = vmpackc.low %vm3841_vm7, %vm3841_vm7  ;;  %v1961_v30 = vsel %vm3845_vm9, 65537, %v3065_v42  ;;  %vm3960_vm6 = vcmp.ne.s16.totalorder %v2438_v41, 0  ;;  %vm1867_vm9 = vcmp.lt.s32.totalorder %v1859_v33, 18 }
 0x16f   : > { %v2685_v5 = vpop.f32.mrb[57].mxu0  ;;  %v1962_v44 = vsel %vm1946_vm14, 65537, %v3065_v42  ;;  %vm3906_vm0 = vmand %vm1851_vm8, %vm1868_vm3  ;;  %vm3969_vm11 = vcmp.ne.s16.totalorder %v2443_v63, 0 }
 0x170   : > { %v2686_v4 = vadd.f32 %v2685_v5, %v2684_v9  ;;  %v2687_v54 = vpop.f32.mrb[58].mxu0  ;;  %vm3915_vm15 = vmpackc.low %vm1868_vm3, %vm1868_vm3  ;;  %v2442_v46 = vcombine.low %v1961_v30, %v1962_v44 }
 0x171   : > { %v2688_v11 = vpop.f32.mrb[59].mxu0  ;;  %vm1952_vm2 = vmpackc.low %vm3906_vm0, %vm3906_vm0 }
 0x172   : > { %v2689_v12 = vadd.f32 %v2688_v11, %v2687_v54  ;;  %v3823_v61 = vadd.f32 %v3725_v49, %v2686_v4  ;;  %vm3951_vm4 = vmpackc.low %vm1863_vm13, %vm1863_vm13  ;;  %v3976_v11 = vsel %vm3915_vm15, 65537, %v3065_v42  ;;  %v3984_v15 = vsel %vm1952_vm2, 65537, %v3065_v42 }
 0x173   : > { %vm1942_vm7 = vmpackc.low %vm3923_vm1, %vm3923_vm1  ;;  %vm3989_vm14 = vcmp.ne.s16.totalorder %v2442_v46, 0 }
 0x174   : > { %v3837_v21 = vadd.f32 %v3728_v18, %v2689_v12  ;;  %vm4023_vm3 = vmand %vm1851_vm8, %vm1867_vm9 }
 0x175   : > { %vm4032_vm12 = vmpackc.low %vm1867_vm9, %vm1867_vm9 }
 0x176   : > { %v2690_v13 = vpop.f32.mrb[60].mxu0  ;;  %vm1950_vm8 = vmpackc.low %vm4023_vm3, %vm4023_vm3 }
 0x177   : > { %v2691_v37 = vpop.f32.mrb[61].mxu0 }
 0x178   : > { %v2692_v43 = vadd.f32 %v2691_v37, %v2690_v13  ;;  %v2693_v35 = vpop.f32.mrb[62].mxu0  ;;  %v2441_v13 = vcombine.low %v3939_v32, %v3947_v0 }
 0x179   : > { %v2694_v7 = vpop.f32.mrb[63].mxu0 }
 0x17a   : > { %v2695_v34 = vadd.f32 %v2694_v7, %v2693_v35  ;;  %v3894_v6 = vadd.f32 %v3731_v57, %v2692_v43  ;;  %v2439_v57 = vcombine.low %v1955_v45, %v1956_v26  ;;  %v2445_v45 = vcombine.low %v3976_v11, %v3984_v15 }
 0x17b   : > { %vm1996_vm10 = vcmp.ne.s16.totalorder %v2441_v13, 0 }
 0x17c   : > { %v3911_v39 = vadd.f32 %v3734_v62, %v2695_v34  ;;  %v3930_v62 = vld [vmem:[%s4133_s4] ss:$0 sm:$0xff]  ;;  %vm3956_vm5 = vcmp.ne.s16.totalorder %v2439_v57, 0  ;;  %vm4089_vm13 = vcmp.ne.s16.totalorder %v2445_v45, 0 }
 0x17e   : > { %v2794_v31 = vpop.f32.mrb[64].mxu0  ;;  %v2802_v54 = vpop.f32.mrb[8].mxu1 }
 0x17f   : > { %v2827_v19 = vadd.f32 %v3746_v51, %v2794_v31  ;;  %v1721_v28 = vpop.f32.mrb[65].mxu0  ;;  %v1753_v17 = vpop.f32.mrb[9].mxu1 }
 0x180   : > { %v2831_v51 = vadd.f32 %v3753_v55, %v1721_v28  ;;  %v2795_v16 = vpop.f32.mrb[66].mxu0  ;;  %v2861_v36 = vadd.f32 %v3740_v47, %v1753_v17  ;;  %v2803_v37 = vpop.f32.mrb[10].mxu1 }
 0x181   : > { %v1809_v4 = vadd.f32 %v2827_v19, %v3930_v62  ;;  %v2835_v59 = vadd.f32 %v3755_v56, %v2795_v16  ;;  %v1724_v14 = vpop.f32.mrb[67].mxu0  ;;  %v2858_v56 = vadd.f32 %v3764_v48, %v2802_v54  ;;  %v4000_v48 = vsel %vm3951_vm4, 65537, %v3065_v42  ;;  %v1756_v35 = vpop.f32.mrb[11].mxu1 }
 0x182   : > { %v1807_v12 = vadd.f32 %v2831_v51, %v3930_v62  ;;  %v2839_v20 = vadd.f32 %v3758_v60, %v1724_v14  ;;  %v4008_v60 = vsel %vm1942_vm7, 65537, %v3065_v42  ;;  %v2864_v47 = vadd.f32 %v3776_v24, %v2803_v37 }
 0x183   : > { %v1810_v23 = vadd.f32 %v2835_v59, %v3930_v62  ;;  %v1817_v18 = vadd.f32 %v2858_v56, %v3930_v62  ;;  %v1825_v7 = vmax.f32 %v1809_v4, 0.0  ;;  %v1815_v26 = vadd.f32 %v2861_v36, %v3930_v62 }
 0x184   : > { %v1808_v43 = vadd.f32 %v2839_v20, %v3930_v62  ;;  %v2867_v50 = vadd.f32 %v3749_v52, %v1756_v35  ;;  %v1823_v3 = vmax.f32 %v1807_v12, 0.0  ;;  %v1818_v53 = vadd.f32 %v2864_v47, %v3930_v62 }
 0x185   : > { %v1826_v10 = vmax.f32 %v1810_v23, 0.0  ;;  %v2440_v24 = vcombine.low %v4000_v48, %v4008_v60  ;;  %v1833_v44 = vmax.f32 %v1817_v18, 0.0  ;;  %v1831_v27 = vmax.f32 %v1815_v26, 0.0 }
 0x186   : > { %v1824_v34 = vmax.f32 %v1808_v43, 0.0  ;;  %v2798_v38 = vpop.f32.mrb[68].mxu0  ;;  %v1816_v52 = vadd.f32 %v2867_v50, %v3930_v62  ;;  %v1834_v63 = vmax.f32 %v1818_v53, 0.0  ;;  %v2806_v33 = vpop.f32.mrb[12].mxu1  ;;  %v1966_v23 = vsel %vm1950_vm8, 65537, %v3065_v42 }
 0x187   : > { %v1840_v22 = vpack.c.bf16 %v1826_v10, %v1825_v7  ;;  %v2843_v57 = vadd.f32 %v3778_v1, %v2798_v38  ;;  %v1737_v41 = vpop.f32.mrb[69].mxu0  ;;  %v1769_v54 = vpop.f32.mrb[13].mxu1  ;;  %v2870_v2 = vadd.f32 %v3894_v6, %v2806_v33  ;;  %vm4097_vm0 = vcmp.ne.s16.totalorder %v2440_v24, 0 }
 0x188   : > { %v1839_v25 = vpack.c.bf16 %v1824_v34, %v1823_v3  ;;  %v2847_v31 = vadd.f32 %v3788_v8, %v1737_v41  ;;  %v2799_v46 = vpop.f32.mrb[70].mxu0  ;;  %v1832_v19 = vmax.f32 %v1816_v52, 0.0  ;;  %v1844_v4 = vpack.c.bf16 %v1834_v63, %v1833_v44  ;;  %v2807_v12 = vpop.f32.mrb[14].mxu1 }
 0x189   : > { %v2002_v1 = vsel %vm3956_vm5, %v1840_v22, 0  ;;  %v1813_v8 = vadd.f32 %v2843_v57, %v3930_v62  ;;  %v2851_v28 = vadd.f32 %v3795_v29, %v2799_v46  ;;  %v1740_v9 = vpop.f32.mrb[71].mxu0  ;;  %v1965_v29 = vsel %vm4032_vm12, 65537, %v3065_v42  ;;  %v1772_v36 = vpop.f32.mrb[15].mxu1 }
 0x18a   : > { %v2448_v51 = vcombine.low %v2002_v1, %v2002_v1  ;;  %v2449_v16 = vcombine.high %v2002_v1, %v2002_v1  ;;  %v2001_v5 = vsel %vm3960_vm6, %v1839_v25, 0  ;;  %v1843_v56 = vpack.c.bf16 %v1832_v19, %v1831_v27 }
 0x18b   : > { %v2446_v59 = vcombine.low %v2001_v5, %v2001_v5  ;;  %v2447_v14 = vcombine.high %v2001_v5, %v2001_v5  ;;  %v2006_v17 = vsel %vm3969_vm11, %v1844_v4, 0  ;;  %v2873_v20 = vadd.f32 %v3823_v61, %v1769_v54 }
 0x18c   : > { %2067 = vst [vmem:[%s4041_s13 + $0x8] sm:$0xf] %v2448_v51  ;;  %2068 = vst [vmem:[%s4041_s13 + $0xc] sm:$0xf] %v2449_v16  ;;  %v2456_v37 = vcombine.low %v2006_v17, %v2006_v17  ;;  %v2457_v18 = vcombine.high %v2006_v17, %v2006_v17  ;;  %v2005_v55 = vsel %vm3989_vm14, %v1843_v56, 0  ;;  %v1814_v6 = vadd.f32 %v2851_v28, %v3930_v62 }
 0x18d   : > { %2065 = vst [vmem:[%s4041_s13] sm:$0xf] %v2446_v59  ;;  %2066 = vst [vmem:[%s4041_s13 + $0x4] sm:$0xf] %v2447_v14  ;;  %v2454_v61 = vcombine.low %v2005_v55, %v2005_v55  ;;  %v2455_v47 = vcombine.high %v2005_v55, %v2005_v55  ;;  %v1829_v43 = vmax.f32 %v1813_v8, 0.0  ;;  %v1811_v35 = vadd.f32 %v2847_v31, %v3930_v62 }
 0x18e   : > { %2075 = vst [vmem:[%s4041_s13 + $0x28] sm:$0xf] %v2456_v37  ;;  %2076 = vst [vmem:[%s4041_s13 + $0x2c] sm:$0xf] %v2457_v18  ;;  %v1821_v42 = vadd.f32 %v2870_v2, %v3930_v62  ;;  %v1830_v7 = vmax.f32 %v1814_v6, 0.0  ;;  %v2876_v26 = vadd.f32 %v3911_v39, %v2807_v12  ;;  %v2855_v10 = vadd.f32 %v3804_v40, %v1740_v9 }
 0x18f   : > { %2073 = vst [vmem:[%s4041_s13 + $0x20] sm:$0xf] %v2454_v61  ;;  %2074 = vst [vmem:[%s4041_s13 + $0x24] sm:$0xf] %v2455_v47  ;;  %v1819_v49 = vadd.f32 %v2873_v20, %v3930_v62  ;;  %v2879_v50 = vadd.f32 %v3837_v21, %v1772_v36  ;;  %v1827_v34 = vmax.f32 %v1811_v35, 0.0  ;;  %v2444_v0 = vcombine.low %v1965_v29, %v1966_v23 }
 0x190   : > { %v1842_v3 = vpack.c.bf16 %v1830_v7, %v1829_v43  ;;  %v1822_v53 = vadd.f32 %v2876_v26, %v3930_v62  ;;  %v1812_v40 = vadd.f32 %v2855_v10, %v3930_v62  ;;  %v1837_v11 = vmax.f32 %v1821_v42, 0.0 }
 0x191   : > { %v1820_v32 = vadd.f32 %v2879_v50, %v3930_v62  ;;  %v1835_v38 = vmax.f32 %v1819_v49, 0.0  ;;  %vm1999_vm15 = vcmp.ne.s16.totalorder %v2444_v0, 0 }
 0x192   : > { %v2004_v15 = vsel %vm1996_vm10, %v1842_v3, 0  ;;  %v1838_v13 = vmax.f32 %v1822_v53, 0.0  ;;  %v1828_v45 = vmax.f32 %v1812_v40, 0.0 }
 0x193   : > { %v2452_v30 = vcombine.low %v2004_v15, %v2004_v15  ;;  %v2453_v44 = vcombine.high %v2004_v15, %v2004_v15  ;;  %v1836_v22 = vmax.f32 %v1820_v32, 0.0 }
 0x194   : > { %v1846_v52 = vpack.c.bf16 %v1838_v13, %v1837_v11  ;;  %v1841_v48 = vpack.c.bf16 %v1828_v45, %v1827_v34 }
 0x195   : > { %2071 = vst [vmem:[%s4041_s13 + $0x18] sm:$0xf] %v2452_v30  ;;  %2072 = vst [vmem:[%s4041_s13 + $0x1c] sm:$0xf] %v2453_v44  ;;  %v1845_v60 = vpack.c.bf16 %v1836_v22, %v1835_v38 }
 0x196   : > { %v2008_v62 = vsel %vm4089_vm13, %v1846_v52, 0  ;;  %v2003_v24 = vsel %vm4097_vm0, %v1841_v48, 0 }
 0x197   : > { %v2460_v57 = vcombine.low %v2008_v62, %v2008_v62  ;;  %v2461_v41 = vcombine.high %v2008_v62, %v2008_v62  ;;  %v2450_v27 = vcombine.low %v2003_v24, %v2003_v24  ;;  %v2451_v63 = vcombine.high %v2003_v24, %v2003_v24 }
 0x198   : > { %v2007_v25 = vsel %vm1999_vm15, %v1845_v60, 0 }
 0x199   : > { %2079 = vst [vmem:[%s4041_s13 + $0x38] sm:$0xf] %v2460_v57  ;;  %2080 = vst [vmem:[%s4041_s13 + $0x3c] sm:$0xf] %v2461_v41  ;;  %v2458_v31 = vcombine.low %v2007_v25, %v2007_v25  ;;  %v2459_v46 = vcombine.high %v2007_v25, %v2007_v25 }
 0x19a   : > { %2069 = vst [vmem:[%s4041_s13 + $0x10] sm:$0xf] %v2450_v27  ;;  %2070 = vst [vmem:[%s4041_s13 + $0x14] sm:$0xf] %v2451_v63 }
 0x19b   : > { %2077 = vst [vmem:[%s4041_s13 + $0x30] sm:$0xf] %v2458_v31  ;;  %2078 = vst [vmem:[%s4041_s13 + $0x34] sm:$0xf] %v2459_v46 }
 0x19c PF: > { %s15_s22 = sadd.s32 1, %s3063_s22   ;;  %s4186_s18 = smov %s3055_s20 }
 0x19d   : > { %p12_p12 = scmp.ge.s32.totalorder %s15_s22, 10   ;;  %s4187_s19 = smov %s3059_s21 }
 0x19e   : > { %s4188_s20 = smov %s4191_s23  ;;  %s4189_s21 = smov %s4195_s24 }
 0x19f   :  { %14 = sbr.rel (!%p12_p12) target bundleno = 3 (0x3), region = 78 }

// kernel: stack_decoder_forward.3
= control target key start
LH: loop header
LB: loop body
LE: loop exit
PB: predicated region body
PF: predicated region fallthrough
CT: control target
= control target key end

     0   :  { %s3096_s18 = smov 0   ;;  %s3098_s19 = smov 0   ;;  %s4129_s0 = inlined_call_operand.vmem [shape: bf16[2,32,16,128], index: 0, kind: input, shape index: {}, may-alias: {0,1,2}]   ;;  %s4130_s1 = inlined_call_operand.vmem [shape: bf16[2,32,16,128], index: 1, kind: input, shape index: {}, may-alias: {0,1,2}]   ;;  %s4131_s2 = inlined_call_operand.vmem [shape: bf16[2,32,16,128], index: 2, kind: input, shape index: {}, may-alias: {0,1,2}]   ;;  %s4132_s3 = inlined_call_operand.vmem [shape: bf16[3,384,128], index: 3, kind: input, shape index: {}]   ;;  %s4133_s4 = inlined_call_operand.vmem [shape: f32[1,128], index: 4, kind: input, shape index: {}]   ;;  %s4134_s5 = inlined_call_operand.vmem [shape: bf16[2,32,16,128], index: 5, kind: output, shape index: {}]  }
   0x1   :  { %s3100_s20 = smov 0   ;;  %s3102_s21 = smov 0  }
   0x2   :  { %s3104_s22 = smov 0  }
   0x3 LB: > { %s24_s23 = sadd.s32 1, %s3055_s20  ;;  %s27_s24 = sadd.s32 1, %s3059_s21  ;;  %s3063_s22 = sphi %s3104_s22, %s15_s22   ;;  %s3059_s21 = sphi %s3102_s21, %s4189_s21   ;;  %s3055_s20 = sphi %s3100_s20, %s4188_s20   ;;  %s3051_s19 = sphi %s3098_s19, %s4187_s19   ;;  %s3047_s18 = sphi %s3096_s18, %s4186_s18  }
   0x4   : > { %p25_p0 = scmp.ge.s32.totalorder %s24_s23, 4  ;;  %p2232_p1 = scmp.ge.s32.totalorder %s3063_s22, 1 }
   0x5   : > { %p273_p2 = scmp.lt.s32.totalorder %s3063_s22, 9 }
   0x6   : > { %s4191_s23 = smov (%p25_p0, %s24_s23), 0  ;;  %s4193_s24 = smov (!%p25_p0, %s27_s24), %s3059_s21 }
   0x7   : > { %p274_p3 = pnand %p2232_p1, %p273_p2  ;;  %p29_p4 = scmp.ge.s32.totalorder %s4193_s24, 2 }
   0x8   : > { %v2945_v0 = vld [vmem:[%s4132_s3 + $0x100] sm:$0xff] (!%p274_p3)   ;;  %s3137_s29 = sshll.u32 (!%p274_p3), %s3047_s18, 3  ;;  %v2948_v3 = vld [vmem:[%s4132_s3 + $0x108] sm:$0xff] (!%p274_p3)   ;;  %p338_p5 = scmp.lt.s32.totalorder (!%p274_p3), %s3051_s19, 1  ;;  %v2951_v6 = vld [vmem:[%s4132_s3 + $0x110] sm:$0xff] (!%p274_p3)   ;;  %vm601_vm0 = vcmask (!%p274_p3), 1047552  }
   0x9   : > { %s4195_s24 = smov (%p29_p4, %s4193_s24), 0  ;;  %277 = sbr.rel (%p274_p3) target bundleno = 412 (0x19c), region = 40 }
   0xa   : > { %v2946_v1 = vld [vmem:[%s4132_s3 + $0x140] sm:$0xff] (!%p274_p3)   ;;  %2472 = vmatprep.subr.bf16.mxu0 (!%p274_p3), %v2945_v0  ;;  %v2949_v4 = vld [vmem:[%s4132_s3 + $0x148] sm:$0xff] (!%p274_p3)   ;;  %p340_p6 = scmp.lt.s32.totalorder (!%p274_p3), %s3137_s29, 31  ;;  %v2952_v7 = vld [vmem:[%s4132_s3 + $0x150] sm:$0xff] (!%p274_p3)   ;;  %s3198_s7 = sadd.s32 (!%p274_p3), 4294967295, %s3137_s29  ;;  %vm558_vm1 = vcmask (!%p274_p3), 1040384  }
   0xb   : > { %v2947_v2 = vld [vmem:[%s4132_s3 + $0xc0] sm:$0xff] (!%p274_p3)   ;;  %2712 = vmatprep.subr.bf16.mxu1 (!%p274_p3), %v2946_v1  ;;  %v2950_v5 = vld [vmem:[%s4132_s3 + $0xc8] sm:$0xff] (!%p274_p3)   ;;  %v2953_v8 = vld [vmem:[%s4132_s3 + $0xd0] sm:$0xff] (!%p274_p3)   ;;  %p350_p7 = scmp.gt.s32.totalorder (!%p274_p3), %s3198_s7, 0  ;;  %p412_p8 = scmp.gt.s32.totalorder (!%p274_p3), %s3047_s18, 0 }
   0xc   : > { %2473 = vmatpush3.bf16.msra.mxu0 (!%p274_p3), %v2947_v2  ;;  %2713 = vmatpush3.bf16.msra.mxu1 (!%p274_p3), %v2946_v1  ;;  %v2954_v9 = vld [vmem:[%s4132_s3 + $0x118] sm:$0xff] (!%p274_p3)   ;;  %v2957_v12 = vld [vmem:[%s4132_s3 + $0x120] sm:$0xff] (!%p274_p3)   ;;  %v2960_v15 = vld [vmem:[%s4132_s3 + $0x128] sm:$0xff] (!%p274_p3)   ;;  %p2239_p9 = scmp.lt.s32.totalorder (!%p274_p3), %s3198_s7, 31  ;;  %vm602_vm2 = vsmask.f32 (!%p274_p3), 7424 }
   0xd   : > { %2474 = vmatprep.subr.bf16.mxu0 (!%p274_p3), %v2948_v3  ;;  %2714 = vmatprep.subr.bf16.mxu1 (!%p274_p3), %v2949_v4  ;;  %v2955_v10 = vld [vmem:[%s4132_s3 + $0x158] sm:$0xff] (!%p274_p3)   ;;  %v2958_v13 = vld [vmem:[%s4132_s3 + $0x160] sm:$0xff] (!%p274_p3)   ;;  %v2961_v16 = vld [vmem:[%s4132_s3 + $0x168] sm:$0xff] (!%p274_p3)   ;;  %vm559_vm3 = vsmask.f32 (!%p274_p3), 256  ;;  %p420_p11 = scmp.lt.s32.totalorder (!%p274_p3), %s3047_s18, 3 }
   0xe   : > { %v2956_v11 = vld [vmem:[%s4132_s3 + $0xd8] sm:$0xff] (!%p274_p3)   ;;  %v2959_v14 = vld [vmem:[%s4132_s3 + $0xe0] sm:$0xff] (!%p274_p3)   ;;  %v2962_v17 = vld [vmem:[%s4132_s3 + $0xe8] sm:$0xff] (!%p274_p3)  }
   0xf   : > { %v2963_v18 = vld [vmem:[%s4132_s3 + $0x130] sm:$0xff] (!%p274_p3)   ;;  %v2966_v21 = vld [vmem:[%s4132_s3 + $0x138] sm:$0xff] (!%p274_p3)   ;;  %vm3240_vm4 = vmand (!%p274_p3), %vm601_vm0, %vm602_vm2 }
  0x10   : > { %s4197_s19 = smov (!%p338_p5, %s3051_s19), 1  ;;  %2475 = vmatpush3.bf16.msra.mxu0 %v2950_v5  ;;  %2715 = vmatpush3.bf16.msra.mxu1 %v2949_v4  ;;  %v2964_v19 = vld [vmem:[%s4132_s3 + $0x170] sm:$0xff]   ;;  %v2967_v22 = vld [vmem:[%s4132_s3 + $0x178] sm:$0xff]   ;;  %vm3252_vm5 = vmand %vm558_vm1, %vm559_vm3 }
  0x11   : > { %s341_s26 = scalar_select %p340_p6, %s3137_s29, 31  ;;  %2476 = vmatprep.subr.bf16.mxu0 %v2951_v6  ;;  %2716 = vmatprep.subr.bf16.mxu1 %v2952_v7  ;;  %v2965_v20 = vld [vmem:[%s4132_s3 + $0xf0] sm:$0xff]   ;;  %v2968_v28 = vld [vmem:[%s4132_s3 + $0xf8] sm:$0xff]   ;;  %v2971_v34 = vld [vmem:[%s4132_s3 + $0x40] sm:$0xff]  }
  0x12   : > { %s3173_s9 = sshll.u32 %s4197_s19, 6  ;;  %v2972_v38 = vld [vmem:[%s4132_s3 + $0x1c0] sm:$0xff]   ;;  %v2975_v45 = vld [vmem:[%s4132_s3 + $0x48] sm:$0xff]   ;;  %v2979_v53 = vld [vmem:[%s4132_s3 + $0x50] sm:$0xff]  }
  0x13   : > { %s2234_s12 = sshll.u32 %s341_s26, 1  ;;  %v2973_v39 = vld [vmem:[%s4132_s3] sm:$0xff]   ;;  %v2976_v47 = vld [vmem:[%s4132_s3 + $0x8] sm:$0xff]   ;;  %v2981_v62 = vld [vmem:[%s4132_s3 + $0x10] sm:$0xff]  }
  0x14   : > { %2477 = vmatpush3.bf16.msra.mxu0 %v2953_v8  ;;  %2717 = vmatpush3.bf16.msra.mxu1 %v2952_v7  ;;  %s3185_s19 = sadd.s32 %s3173_s9, %s2234_s12  ;;  %v2974_v44 = vld [vmem:[%s4132_s3 + $0x180] sm:$0xff]   ;;  %v2980_v54 = vld [vmem:[%s4132_s3 + $0x1c8] sm:$0xff]   ;;  %v2983_v1 = vld [vmem:[%s4132_s3 + $0x58] sm:$0xff]  }
  0x15   : > { %2478 = vmatprep.subr.bf16.mxu0 %v2954_v9  ;;  %2718 = vmatprep.subr.bf16.mxu1 %v2955_v10  ;;  %s2236_s28 = sshll.u32 %s3185_s19, 2  ;;  %v2982_v60 = vld [vmem:[%s4132_s3 + $0x188] sm:$0xff]   ;;  %v2984_v5 = vld [vmem:[%s4132_s3 + $0x18] sm:$0xff]  }
  0x16   : > { %s3211_s15 = scalar_lea.vmem %s4129_s0, %s2236_s28  ;;  %s4041_s13 = scalar_lea.vmem %s4134_s5, %s2236_s28 }
  0x17   : > { %v3225_v23 = vld [vmem:[%s3211_s15] sm:$0xff]   ;;  %v3232_v26 = vld [vmem:[%s3211_s15 + $0x8] sm:$0xff]   ;;  %s3237_s6 = scalar_select %p350_p7, %s3198_s7, 0  ;;  %v3290_v48 = vld [vmem:[%s3211_s15 + $0x10] sm:$0xff]  }
  0x18   : > { %2479 = vmatpush3.bf16.msra.mxu0 %v2956_v11  ;;  %2719 = vmatpush3.bf16.msra.mxu1 %v2955_v10  ;;  %v486_v24 = vshrl.u32 %v3225_v23, 16  ;;  %v489_v25 = vshll.u32 %v3225_v23, 16  ;;  %s3246_s8 = scalar_select %p412_p8, 1, 0  ;;  %v493_v32 = vshrl.u32 %v3232_v26, 16  ;;  %v496_v33 = vshll.u32 %v3232_v26, 16 }
  0x19   : > { %2480 = vmatprep.subr.bf16.mxu0 %v2957_v12  ;;  %2720 = vmatprep.subr.bf16.mxu1 %v2958_v13  ;;  %v3295_v50 = vld [vmem:[%s3211_s15 + $0x18] sm:$0xff]   ;;  %s4199_s6 = smov (!%p2239_p9, %s3237_s6), 31  ;;  %v500_v51 = vshrl.u32 %v3290_v48, 16  ;;  %v503_v52 = vshll.u32 %v3290_v48, 16  ;;  %v3332_v3 = vld [vmem:[%s3211_s15 + $0x20] sm:$0xff]   ;;  %v3344_v6 = vld [vmem:[%s3211_s15 + $0x28] sm:$0xff]  }
  0x1a   : > { %897 = vmatprep.mubr.bf16.mxu0 %v3225_v23  ;;  %v573_v29 = vrot.slane %v489_v25, 1  ;;  %v488_v30 = vrot.slane %v486_v24, 7  ;;  %v575_v37 = vrot.slane %v496_v33, 1  ;;  %v495_v40 = vrot.slane %v493_v32, 7  ;;  %s2244_s11 = sshll.u32 %s4199_s6, 1  ;;  %v2987_v10 = vld [vmem:[%s4132_s3 + $0x60] sm:$0xff]  }
  0x1b   : > { %v507_v55 = vshrl.u32 %v3295_v50, 16  ;;  %v510_v56 = vshll.u32 %v3295_v50, 16  ;;  %v577_v57 = vrot.slane %v503_v52, 1  ;;  %v502_v63 = vrot.slane %v500_v51, 7  ;;  %s3361_s7 = sadd.s32 %s2244_s11, %s3173_s9 }
  0x1c   : > { %2481 = vmatpush3.bf16.msra.mxu0 %v2959_v14  ;;  %2721 = vmatpush3.bf16.msra.mxu1 %v2958_v13  ;;  %v574_v35 = vor.u32 %v573_v29, %v486_v24  ;;  %v491_v36 = vor.u32 %v489_v25, %v488_v30  ;;  %v576_v43 = vor.u32 %v575_v37, %v493_v32  ;;  %v514_v7 = vshrl.u32 %v3332_v3, 16  ;;  %s2246_s10 = sshll.u32 %s3361_s7, 2  ;;  %v2991_v25 = vld [vmem:[%s4132_s3 + $0x68] sm:$0xff]   ;;  %v3395_v30 = vld [vmem:[%s3211_s15 + $0x30] sm:$0xff]   ;;  %v2996_v37 = vld [vmem:[%s4132_s3 + $0x1d8] sm:$0xff]  }
  0x1d   : > { %2482 = vmatprep.subr.bf16.mxu0 %v2960_v15  ;;  %2722 = vmatprep.subr.bf16.mxu1 %v2961_v16  ;;  %v498_v49 = vor.u32 %v496_v33, %v495_v40  ;;  %v579_v59 = vrot.slane %v510_v56, 1  ;;  %v578_v61 = vor.u32 %v577_v57, %v500_v51  ;;  %v517_v8 = vshll.u32 %v3332_v3, 16  ;;  %v2988_v15 = vld [vmem:[%s4132_s3 + $0x1d0] sm:$0xff]   ;;  %v2992_v29 = vld [vmem:[%s4132_s3 + $0x28] sm:$0xff]   ;;  %v3404_v33 = vld [vmem:[%s3211_s15 + $0x38] sm:$0xff]   ;;  %s360_s30 = scalar_lea.vmem %s4130_s1, %s2246_s10 }
  0x1e   : > { %v3269_v41 = vsel %vm3240_vm4, %v574_v35, 0  ;;  %v3273_v42 = vsel %vm3252_vm5, 0, %v491_v36  ;;  %v3284_v46 = vsel %vm3240_vm4, %v576_v43, 0  ;;  %v505_v9 = vor.u32 %v503_v52, %v502_v63  ;;  %v2995_v36 = vld [vmem:[%s4132_s3 + $0x70] sm:$0xff]   ;;  %v414_v57 = vld [vmem:[%s360_s30 + $0x4] sm:$0xf] }
  0x1f   : > { %2728 = vmatprep.mubr.bf16.mxu1 %v3269_v41  ;;  %v3315_v58 = vsel %vm3252_vm5, 0, %v498_v49  ;;  %v580_v0 = vor.u32 %v579_v59, %v507_v55  ;;  %v3329_v2 = vsel %vm3240_vm4, %v578_v61, 0  ;;  %v509_v11 = vrot.slane %v507_v55, 7  ;;  %v2999_v55 = vld [vmem:[%s4132_s3 + $0x78] sm:$0xff]   ;;  %v3023_v51 = vld [vmem:[%s4132_s3 + $0x230] sm:$0xff]  }
  0x20   : > { %2483 = vmatpush3.bf16.msra.mxu0 %v2962_v17  ;;  %2723 = vmatpush3.bf16.msra.mxu1 %v2961_v16  ;;  %v521_v12 = vshrl.u32 %v3344_v6, 16  ;;  %v524_v13 = vshll.u32 %v3344_v6, 16  ;;  %v581_v14 = vrot.slane %v517_v8, 1  ;;  %v531_v35 = vshll.u32 %v3395_v30, 16  ;;  %s423_s27 = scalar_select %p420_p11, 1, 0 }
  0x21   : > { %2484 = vmatprep.subr.bf16.mxu0 %v2963_v18  ;;  %2724 = vmatprep.subr.bf16.mxu1 %v2964_v19  ;;  %v3338_v4 = vsel %vm3240_vm4, %v580_v0, 0  ;;  %v3367_v18 = vsel %vm3252_vm5, 0, %v505_v9  ;;  %v416_v40 = vstv %s3246_s8  ;;  %v3002_v0 = vld [vmem:[%s4132_s3 + $0x1e0] sm:$0xff]  }
  0x22   : > { %v583_v16 = vrot.slane %v524_v13, 1  ;;  %v582_v17 = vor.u32 %v581_v14, %v514_v7  ;;  %v585_v43 = vrot.slane %v531_v35, 1  ;;  %vm3429_vm6 = vcmp.eq.s32.totalorder %v416_v40, 1  ;;  %v3010_v40 = vld [vmem:[%s4132_s3 + $0x98] sm:$0xff]  }
  0x24   : > { %2485 = vmatpush3.bf16.msra.mxu0 %v2965_v20  ;;  %2725 = vmatpush3.bf16.msra.mxu1 %v2964_v19  ;;  %v2990_v19 = vld [vmem:[%s4132_s3 + $0x190] sm:$0xff]   ;;  %v512_v20 = vor.u32 %v510_v56, %v509_v11  ;;  %v3380_v24 = vsel %vm3240_vm4, %v582_v17, 0  ;;  %v413_v56 = vld [vmem:[%s360_s30] sm:$0xf]  ;;  %s2471_s30 = sadd.s32 8, %s3137_s29 }
  0x25   : > { %2486 = vmatprep.subr.bf16.mxu0 %v2966_v21  ;;  %2726 = vmatprep.subr.bf16.mxu1 %v2967_v22  ;;  %v584_v21 = vor.u32 %v583_v16, %v521_v12  ;;  %v418_v61 = vsel %vm3429_vm6, %v413_v56, 0  ;;  %p3595_p10 = scmp.lt.s32.totalorder %s2471_s30, 31 }
  0x26   : > { %v3401_v32 = vsel %vm3252_vm5, 0, %v512_v20  ;;  %v3008_v20 = vld [vmem:[%s4132_s3 + $0x1f0] sm:$0xff]  }
  0x27   : > { %s4201_s30 = smov (!%p3595_p10, %s2471_s30), 31 }
  0x28   : > { %2487 = vmatpush3.bf16.msra.mxu0 %v2968_v28  ;;  %2727 = vmatpush3.bf16.msra.mxu1 %v2967_v22  ;;  %v2989_v22 = vld [vmem:[%s4132_s3 + $0x20] sm:$0xff]   ;;  %v3389_v28 = vsel %vm3240_vm4, %v584_v21, 0  ;;  %s4203_s30 = smov (!%p3595_p10, %s4201_s30), 31 }
  0x29   : > { %2552 = vmatprep.subr.bf16.mxu1 %v2971_v34  ;;  %2632 = vmatprep.subr.bf16.mxu0 %v2972_v38  ;;  %v528_v34 = vshrl.u32 %v3395_v30, 16  ;;  %v535_v38 = vshrl.u32 %v3404_v33, 16  ;;  %s2251_s7 = sshll.u32 %s4203_s30, 1 }
  0x2a   : > { %s375_s15 = sadd.s32 %s2251_s7, %s3173_s9 }
  0x2b   : > { %898 = vmatmul.mubr.bf16.vlgmr.msra.gmra.mrb[0].mxu0 %v3273_v42  ;;  %2729 = vmatmul.mubr.bf16.vlgmr.msra.gmra.mrb[0].mxu1 %v3284_v46  ;;  %v586_v49 = vor.u32 %v585_v43, %v528_v34  ;;  %v537_v43 = vrot.slane %v535_v38, 7  ;;  %s2253_s18 = sshll.u32 %s375_s15, 2 }
  0x2c   : > { %2553 = vmatpush3.bf16.msra.mxu1 %v2973_v39  ;;  %2633 = vmatpush3.bf16.msra.mxu0 %v2974_v44  ;;  %v538_v39 = vshll.u32 %v3404_v33, 16  ;;  %v516_v44 = vrot.slane %v514_v7, 7  ;;  %v3003_v7 = vld [vmem:[%s4132_s3 + $0x1a0] sm:$0xff]   ;;  %s377_s8 = scalar_lea.vmem %s4131_s2, %s2253_s18 }
  0x2d   : > { %2554 = vmatprep.subr.bf16.mxu1 %v2975_v45  ;;  %905 = vmatprep.mubr.bf16.mxu0 %v3232_v26  ;;  %v422_v56 = vld [vmem:[%s377_s8 + $0x4] sm:$0xf] }
  0x2e   : > { %2634 = vmatprep.subr.bf16.mxu0 %v2980_v54  ;;  %2732 = vmatprep.mubr.bf16.mxu1 %v3329_v2  ;;  %v587_v45 = vrot.slane %v538_v39, 1  ;;  %v3440_v54 = vsel %vm3240_vm4, %v586_v49, 0  ;;  %v519_v63 = vor.u32 %v517_v8, %v516_v44  ;;  %v523_v8 = vrot.slane %v521_v12, 7  ;;  %v3006_v12 = vld [vmem:[%s4132_s3 + $0x1a8] sm:$0xff]  }
  0x2f   : > { %v3573_v49 = vld [vmem:[%s4132_s3 + $0x208] sm:$0xff]  }
  0x30   : > { %2555 = vmatpush3.bf16.msra.mxu1 %v2976_v47  ;;  %2635 = vmatpush3.bf16.msra.mxu0 %v2982_v60  ;;  %v2998_v47 = vld [vmem:[%s4132_s3 + $0x198] sm:$0xff]   ;;  %v588_v52 = vor.u32 %v587_v45, %v535_v38  ;;  %v3480_v11 = vsel %vm3252_vm5, 0, %v519_v63  ;;  %v526_v17 = vor.u32 %v524_v13, %v523_v8  ;;  %v3015_v38 = vld [vmem:[%s4132_s3 + $0xa8] sm:$0xff]  }
  0x31   : > { %2556 = vmatprep.subr.bf16.mxu1 %v2979_v53  ;;  %2636 = vmatprep.subr.bf16.mxu0 %v2988_v15  ;;  %v2997_v53 = vld [vmem:[%s4132_s3 + $0x30] sm:$0xff]   ;;  %v3000_v60 = vld [vmem:[%s4132_s3 + $0x38] sm:$0xff]   ;;  %v3005_v15 = vld [vmem:[%s4132_s3 + $0x1e8] sm:$0xff]  }
  0x32   : > { %v3449_v59 = vsel %vm3240_vm4, %v588_v52, 0  ;;  %v3510_v13 = vsel %vm3252_vm5, 0, %v526_v17 }
  0x33   : > { %906 = vmatmul.mubr.bf16.gmra.mrb[4].mxu0 %v3315_v58  ;;  %2733 = vmatmul.mubr.bf16.gmra.mrb[4].mxu1 %v3338_v4 }
  0x34   : > { %913 = vmatprep.mubr.bf16.mxu0 %v3290_v48  ;;  %2557 = vmatpush3.bf16.msra.mxu1 %v2981_v62  ;;  %v419_v62 = vsel %vm3429_vm6, %v414_v57, 0 }
  0x35   : > { %2558 = vmatprep.subr.bf16.mxu1 %v2983_v1  ;;  %2637 = vmatpush3.bf16.msra.mxu0 %v2990_v19  ;;  %v3465_v1 = vcombine.low %v418_v61, %v419_v62  ;;  %v3004_v19 = vld [vmem:[%s4132_s3 + $0x88] sm:$0xff]  }
  0x36   : > { %2736 = vmatprep.mubr.bf16.mxu1 %v3380_v24  ;;  %2638 = vmatprep.subr.bf16.mxu0 %v2996_v37  ;;  %v3526_v37 = vld [vmem:[%s4132_s3 + $0x200] sm:$0xff]  }
  0x37   : > { %v479_v9 = vshrl.u32 %v3465_v1, 16 }
  0x38   : > { %2559 = vmatpush3.bf16.msra.mxu1 %v2984_v5  ;;  %v3001_v5 = vld [vmem:[%s4132_s3 + $0x80] sm:$0xff]  }
  0x39   : > { %2560 = vmatprep.subr.bf16.mxu1 %v2987_v10  ;;  %2639 = vmatpush3.bf16.msra.mxu0 %v2998_v47  ;;  %v482_v10 = vshll.u32 %v3465_v1, 16  ;;  %v481_v14 = vrot.slane %v479_v9, 7  ;;  %v3017_v47 = vld [vmem:[%s4132_s3 + $0xb0] sm:$0xff]  }
  0x3a   : > { %2640 = vmatprep.subr.bf16.mxu0 %v3002_v0 }
  0x3b   : > { %914 = vmatmul.mubr.bf16.gmra.mrb[8].mxu0 %v3367_v18  ;;  %2737 = vmatmul.mubr.bf16.gmra.mrb[8].mxu1 %v3389_v28  ;;  %v484_v16 = vor.u32 %v482_v10, %v481_v14 }
  0x3c   : > { %921 = vmatprep.mubr.bf16.mxu0 %v3295_v50  ;;  %2561 = vmatpush3.bf16.msra.mxu1 %v2989_v22  ;;  %v3009_v22 = vld [vmem:[%s4132_s3 + $0x1b0] sm:$0xff]  }
  0x3d   : > { %2562 = vmatprep.subr.bf16.mxu1 %v2991_v25  ;;  %2740 = vmatprep.mubr.bf16.mxu1 %v3440_v54  ;;  %v561_v21 = vsel %vm3252_vm5, 0, %v484_v16  ;;  %v3011_v25 = vld [vmem:[%s4132_s3 + $0x1f8] sm:$0xff]  }
  0x3e   : > { %2641 = vmatpush3.bf16.msra.mxu0 %v3003_v7 }
  0x3f   : > { %2642 = vmatprep.subr.bf16.mxu0 %v3005_v15 }
  0x40   : > { %2563 = vmatpush3.bf16.msra.mxu1 %v2992_v29  ;;  %v530_v29 = vrot.slane %v528_v34, 7 }
  0x41   : > { %2564 = vmatprep.subr.bf16.mxu1 %v2995_v36  ;;  %v3007_v36 = vld [vmem:[%s4132_s3 + $0x90] sm:$0xff]  }
  0x42   : > { %2643 = vmatpush3.bf16.msra.mxu0 %v3006_v12  ;;  %v533_v34 = vor.u32 %v531_v35, %v530_v29  ;;  %v3013_v35 = vld [vmem:[%s4132_s3 + $0xa0] sm:$0xff]  }
  0x43   : > { %922 = vmatmul.mubr.bf16.gmra.mrb[12].mxu0 %v3401_v32  ;;  %2741 = vmatmul.mubr.bf16.gmra.mrb[12].mxu1 %v3449_v59 }
  0x44   : > { %929 = vmatprep.mubr.bf16.mxu0 %v3332_v3  ;;  %2565 = vmatpush3.bf16.msra.mxu1 %v2997_v53  ;;  %v3542_v44 = vsel %vm3252_vm5, 0, %v533_v34  ;;  %v424_v53 = vstv %s423_s27 }
  0x45   : > { %2566 = vmatprep.subr.bf16.mxu1 %v2999_v55  ;;  %1235 = vmatprep.mubr.bf16.mxu1 %v3465_v1  ;;  %v421_v55 = vld [vmem:[%s377_s8] sm:$0xf]  ;;  %vm425_vm7 = vcmp.eq.s32.totalorder %v424_v53, 1 }
  0x46   : > { %2644 = vmatprep.subr.bf16.mxu0 %v3008_v20  ;;  %v427_v57 = vsel %vm425_vm7, %v422_v56, 0 }
  0x47   : > { %2645 = vmatpush3.bf16.msra.mxu0 %v3009_v22 }
  0x48   : > { %2567 = vmatpush3.bf16.msra.mxu1 %v3000_v60  ;;  %2646 = vmatprep.subr.bf16.mxu0 %v3011_v25 }
  0x49   : > { %2744 = vmatprep.subr.bf16.mxu1 %v3001_v5 }
  0x4b   : > { %930 = vmatmul.mubr.bf16.gmra.mrb[16].mxu0 %v3480_v11  ;;  %1236 = vmatmul.mubr.bf16.vlgmr.msra.gmra.mrb[16].mxu1 %v561_v21 }
  0x4c   : > { %937 = vmatprep.mubr.bf16.mxu0 %v3344_v6  ;;  %2745 = vmatpush3.bf16.msra.mxu1 %v3001_v5 }
  0x4d   : > { %1243 = vmatprep.mubr.bf16.mxu1 %v3225_v23  ;;  %2746 = vmatprep.subr.bf16.mxu1 %v3004_v19  ;;  %v3012_v23 = vld [vmem:[%s4132_s3 + $0x1b8] sm:$0xff]  }
  0x4e   : > { %2647 = vmatpush3.bf16.msra.mxu0 %v3012_v23 }
  0x4f   : > { %2776 = vmatprep.subr.bf16.mxu0 %v3526_v37 }
  0x50   : > { %2747 = vmatpush3.bf16.msra.mxu1 %v3004_v19 }
  0x51   : > { %2748 = vmatprep.subr.bf16.mxu1 %v3007_v36 }
  0x53   : > { %938 = vmatmul.mubr.bf16.gmra.mrb[20].mxu0 %v3510_v13  ;;  %1244 = vmatmul.mubr.bf16.gmra.mrb[20].mxu1 %v3273_v42  ;;  %v540_v42 = vor.u32 %v538_v39, %v537_v43  ;;  %v3019_v39 = vld [vmem:[%s4132_s3 + $0xb8] sm:$0xff]  }
  0x54   : > { %945 = vmatprep.mubr.bf16.mxu0 %v3395_v30  ;;  %1251 = vmatprep.mubr.bf16.mxu1 %v3232_v26 }
  0x55   : > { %2749 = vmatpush3.bf16.msra.mxu1 %v3007_v36  ;;  %v3558_v45 = vsel %vm3252_vm5, 0, %v540_v42 }
  0x56   : > { %2750 = vmatprep.subr.bf16.mxu1 %v3010_v40 }
  0x59   : > { %2751 = vmatpush3.bf16.msra.mxu1 %v3010_v40 }
  0x5a   : > { %2752 = vmatprep.subr.bf16.mxu1 %v3013_v35 }
  0x5b   : > { %946 = vmatmul.mubr.bf16.gmra.mrb[24].mxu0 %v3542_v44  ;;  %1252 = vmatmul.mubr.bf16.gmra.mrb[24].mxu1 %v3315_v58 }
  0x5c   : > { %953 = vmatprep.mubr.bf16.mxu0 %v3404_v33  ;;  %1259 = vmatprep.mubr.bf16.mxu1 %v3290_v48 }
  0x5d   : > { %2753 = vmatpush3.bf16.msra.mxu1 %v3013_v35 }
  0x5e   : > { %2754 = vmatprep.subr.bf16.mxu1 %v3015_v38 }
  0x61   : > { %2755 = vmatpush3.bf16.msra.mxu1 %v3015_v38 }
  0x62   : > { %2756 = vmatprep.subr.bf16.mxu1 %v3017_v47 }
  0x63   : > { %954 = vmatmul.mubr.bf16.gmra.mrb[28].mxu0 %v3558_v45  ;;  %1260 = vmatmul.mubr.bf16.gmra.mrb[28].mxu1 %v3367_v18 }
  0x64   : > { %1622 = vmatprep.mubr.bf16.mxu0 %v3232_v26  ;;  %1267 = vmatprep.mubr.bf16.mxu1 %v3295_v50  ;;  %v3582_v26 = vld [vmem:[%s4132_s3 + $0x210] sm:$0xff]  }
  0x65   : > { %2757 = vmatpush3.bf16.msra.mxu1 %v3017_v47 }
  0x66   : > { %2758 = vmatprep.subr.bf16.mxu1 %v3019_v39 }
  0x69   : > { %2759 = vmatpush3.bf16.msra.mxu1 %v3019_v39 }
  0x6a   : > { %2808 = vmatprep.subr.bf16.mxu1 %v3526_v37 }
  0x6b   : > { %1623 = vmatmul.mubr.bf16.vlgmr.msra.gmra.mrb[32].mxu0 %v3315_v58  ;;  %1268 = vmatmul.mubr.bf16.gmra.mrb[32].mxu1 %v3401_v32  ;;  %v3606_v58 = vld [vmem:[%s4132_s3 + $0x220] sm:$0xff]  }
  0x6c   : > { %2777 = vmatpush3.bf16.msra.mxu0 %v3526_v37  ;;  %1630 = vmatprep.mubr.bf16.mxu0 %v3290_v48  ;;  %v3593_v48 = vld [vmem:[%s4132_s3 + $0x218] sm:$0xff]  }
  0x6d   : > { %2778 = vmatprep.subr.bf16.mxu0 %v3573_v49  ;;  %1275 = vmatprep.mubr.bf16.mxu1 %v3332_v3 }
  0x70   : > { %2779 = vmatpush3.bf16.msra.mxu0 %v3573_v49 }
  0x71   : > { %2780 = vmatprep.subr.bf16.mxu0 %v3582_v26 }
  0x73   : > { %1631 = vmatmul.mubr.bf16.gmra.mrb[36].mxu0 %v3367_v18  ;;  %1276 = vmatmul.mubr.bf16.gmra.mrb[36].mxu1 %v3480_v11  ;;  %v571_v18 = vrot.slane %v482_v10, 1 }
  0x74   : > { %1638 = vmatprep.mubr.bf16.mxu0 %v3295_v50  ;;  %2781 = vmatpush3.bf16.msra.mxu0 %v3582_v26  ;;  %v3022_v50 = vld [vmem:[%s4132_s3 + $0x228] sm:$0xff]  }
  0x75   : > { %2782 = vmatprep.subr.bf16.mxu0 %v3593_v48  ;;  %1283 = vmatprep.mubr.bf16.mxu1 %v3344_v6 }
  0x78   : > { %2783 = vmatpush3.bf16.msra.mxu0 %v3593_v48 }
  0x79   : > { %2784 = vmatprep.subr.bf16.mxu0 %v3606_v58 }
  0x7b   : > { %1639 = vmatmul.mubr.bf16.gmra.mrb[40].mxu0 %v3401_v32  ;;  %1284 = vmatmul.mubr.bf16.gmra.mrb[40].mxu1 %v3510_v13  ;;  %v572_v32 = vor.u32 %v571_v18, %v479_v9 }
  0x7c   : > { %1646 = vmatprep.mubr.bf16.mxu0 %v3332_v3  ;;  %2785 = vmatpush3.bf16.msra.mxu0 %v3606_v58  ;;  %v3024_v3 = vld [vmem:[%s4132_s3 + $0x238] sm:$0xff]  }
  0x7d   : > { %2786 = vmatprep.subr.bf16.mxu0 %v3022_v50  ;;  %1291 = vmatprep.mubr.bf16.mxu1 %v3395_v30  ;;  %v604_v52 = vsel %vm3240_vm4, %v572_v32, 0 }
  0x80   : > { %2787 = vmatpush3.bf16.msra.mxu0 %v3022_v50 }
  0x81   : > { %2788 = vmatprep.subr.bf16.mxu0 %v3023_v51 }
  0x83   : > { %1647 = vmatmul.mubr.bf16.gmra.mrb[44].mxu0 %v3480_v11  ;;  %1292 = vmatmul.mubr.bf16.gmra.mrb[44].mxu1 %v3542_v44 }
  0x84   : > { %1654 = vmatprep.mubr.bf16.mxu0 %v3344_v6  ;;  %2789 = vmatpush3.bf16.msra.mxu0 %v3023_v51  ;;  %v426_v6 = vsel %vm425_vm7, %v421_v55, 0 }
  0x85   : > { %2790 = vmatprep.subr.bf16.mxu0 %v3024_v3  ;;  %2760 = vmatprep.mubr.bf16.mxu1 %v604_v52  ;;  %v2267_v60 = vcombine.low %v426_v6, %v427_v57 }
  0x87   : > { %v545_v61 = vshll.u32 %v2267_v60, 16 }
  0x88   : > { %2791 = vmatpush3.bf16.msra.mxu0 %v3024_v3 }
  0x89   : > { %v589_v63 = vrot.slane %v545_v61, 1 }
  0x8b   : > { %1655 = vmatmul.mubr.bf16.gmra.mrb[48].mxu0 %v3510_v13  ;;  %2761 = vmatmul.mubr.bf16.vlgmr.msra.gmra.mrb[0].mxu1 %v3269_v41 }
  0x8c   : > { %1662 = vmatprep.mubr.bf16.mxu0 %v3395_v30  ;;  %2816 = vmatpush3.bf16.msra.mxu1 %v3526_v37  ;;  %v542_v30 = vshrl.u32 %v2267_v60, 16 }
  0x8d   : > { %2764 = vmatprep.mubr.bf16.mxu1 %v3284_v46  ;;  %2809 = vmatprep.subr.bf16.mxu1 %v3573_v49 }
  0x8e   : > { %v544_v41 = vrot.slane %v542_v30, 7  ;;  %v590_v31 = vor.u32 %v589_v63, %v542_v30 }
  0x90   : > { %2817 = vmatpush3.bf16.msra.mxu1 %v3573_v49  ;;  %v547_v62 = vor.u32 %v545_v61, %v544_v41 }
  0x91   : > { %2810 = vmatprep.subr.bf16.mxu1 %v3582_v26 }
  0x93   : > { %1663 = vmatmul.mubr.bf16.gmra.mrb[52].mxu0 %v3542_v44  ;;  %2765 = vmatmul.mubr.bf16.gmra.mrb[4].mxu1 %v3329_v2 }
  0x94   : > { %1670 = vmatprep.mubr.bf16.mxu0 %v3404_v33  ;;  %2818 = vmatpush3.bf16.msra.mxu1 %v3582_v26  ;;  %v570_v33 = vsel %vm3252_vm5, 0, %v547_v62 }
  0x95   : > { %2768 = vmatprep.mubr.bf16.mxu1 %v3338_v4  ;;  %2811 = vmatprep.subr.bf16.mxu1 %v3593_v48 }
  0x98   : > { %2819 = vmatpush3.bf16.msra.mxu1 %v3593_v48 }
  0x99   : > { %2812 = vmatprep.subr.bf16.mxu1 %v3606_v58 }
  0x9b   : > { %1671 = vmatmul.mubr.bf16.gmra.mrb[56].mxu0 %v3558_v45  ;;  %2769 = vmatmul.mubr.bf16.gmra.mrb[8].mxu1 %v3380_v24 }
  0x9c   : > { %1678 = vmatprep.mubr.bf16.mxu0 %v2267_v60  ;;  %2820 = vmatpush3.bf16.msra.mxu1 %v3606_v58 }
  0x9d   : > { %2772 = vmatprep.mubr.bf16.mxu1 %v3389_v28  ;;  %2813 = vmatprep.subr.bf16.mxu1 %v3022_v50 }
  0xa0   : > { %2821 = vmatpush3.bf16.msra.mxu1 %v3022_v50 }
  0xa1   : > { %2814 = vmatprep.subr.bf16.mxu1 %v3023_v51 }
  0xa3   : > { %1679 = vmatmul.mubr.bf16.gmra.mrb[60].mxu0 %v570_v33  ;;  %2773 = vmatmul.mubr.bf16.gmra.mrb[12].mxu1 %v3440_v54 }
  0xa4   : > { %2792 = vmatprep.mubr.bf16.mxu0 %v3284_v46  ;;  %2822 = vmatpush3.bf16.msra.mxu1 %v3023_v51  ;;  %v613_v46 = vsel %vm3240_vm4, %v590_v31, 0 }
  0xa5   : > { %2800 = vmatprep.mubr.bf16.mxu1 %v3389_v28  ;;  %2815 = vmatprep.subr.bf16.mxu1 %v3024_v3 }
  0xa8   : > { %2823 = vmatpush3.bf16.msra.mxu1 %v3024_v3 }
  0xab   : > { %2793 = vmatmul.mubr.bf16.vlgmr.msra.gmra.mrb[64].mxu0 %v3329_v2  ;;  %2801 = vmatmul.mubr.bf16.vlgmr.msra.gmra.mrb[8].mxu1 %v3440_v54 }
  0xac   : > { %2796 = vmatprep.mubr.bf16.mxu0 %v3338_v4  ;;  %2804 = vmatprep.mubr.bf16.mxu1 %v3449_v59 }
  0xb3   : > { %2797 = vmatmul.mubr.bf16.gmra.mrb[68].mxu0 %v3380_v24  ;;  %2805 = vmatmul.mubr.bf16.gmra.mrb[12].mxu1 %v613_v46 }
  0xfe   : > { %v2488_v0 = vpop.f32.mrb[0].mxu0 }
  0xff   : > { %v2489_v28 = vpop.f32.mrb[1].mxu0 }
 0x100   : > { %v2490_v1 = vadd.f32 %v2489_v28, %v2488_v0  ;;  %v2491_v5 = vpop.f32.mrb[2].mxu0 }
 0x101   : > { %v2492_v7 = vpop.f32.mrb[3].mxu0 }
 0x102   : > { %v2493_v2 = vadd.f32 %v2492_v7, %v2491_v5 }
 0x106   : > { %v2494_v8 = vpop.f32.mrb[4].mxu0 }
 0x107   : > { %v2495_v9 = vpop.f32.mrb[5].mxu0 }
 0x108   : > { %v2496_v4 = vadd.f32 %v2495_v9, %v2494_v8  ;;  %v2497_v10 = vpop.f32.mrb[6].mxu0 }
 0x109   : > { %v2498_v54 = vpop.f32.mrb[7].mxu0 }
 0x10a   : > { %v2499_v11 = vadd.f32 %v2498_v54, %v2497_v10 }
 0x10e   : > { %v2500_v59 = vpop.f32.mrb[8].mxu0 }
 0x10f   : > { %v2501_v14 = vpop.f32.mrb[9].mxu0 }
 0x110   : > { %v2502_v15 = vadd.f32 %v2501_v14, %v2500_v59  ;;  %v2503_v24 = vpop.f32.mrb[10].mxu0 }
 0x111   : > { %v2504_v12 = vpop.f32.mrb[11].mxu0 }
 0x112   : > { %v2505_v27 = vadd.f32 %v2504_v12, %v2503_v24 }
 0x116   : > { %v2506_v16 = vpop.f32.mrb[12].mxu0 }
 0x117   : > { %v2507_v17 = vpop.f32.mrb[13].mxu0 }
 0x118   : > { %v2508_v19 = vadd.f32 %v2507_v17, %v2506_v16  ;;  %v2509_v20 = vpop.f32.mrb[14].mxu0 }
 0x119   : > { %v2510_v21 = vpop.f32.mrb[15].mxu0 }
 0x11a   : > { %v2511_v22 = vadd.f32 %v2510_v21, %v2509_v20 }
 0x11e   : > { %v2512_v13 = vpop.f32.mrb[16].mxu0  ;;  %v2568_v23 = vpop.f32.mrb[16].mxu1 }
 0x11f   : > { %v2513_v25 = vpop.f32.mrb[17].mxu0  ;;  %v2569_v34 = vpop.f32.mrb[17].mxu1 }
 0x120   : > { %v3676_v29 = vadd.f32 %v2513_v25, %v2512_v13  ;;  %v2515_v36 = vpop.f32.mrb[18].mxu0  ;;  %v2570_v43 = vadd.f32 %v2569_v34, %v2568_v23  ;;  %v2571_v44 = vpop.f32.mrb[18].mxu1 }
 0x121   : > { %v2516_v37 = vpop.f32.mrb[19].mxu0  ;;  %v2572_v35 = vpop.f32.mrb[19].mxu1 }
 0x122   : > { %v3678_v40 = vadd.f32 %v2516_v37, %v2515_v36  ;;  %v2573_v42 = vadd.f32 %v2572_v35, %v2571_v44  ;;  %v3680_v38 = vadd.f32 %v2570_v43, %v2490_v1 }
 0x124   : > { %v3682_v39 = vadd.f32 %v2573_v42, %v2493_v2 }
 0x126   : > { %v2518_v45 = vpop.f32.mrb[20].mxu0  ;;  %v2574_v48 = vpop.f32.mrb[20].mxu1 }
 0x127   : > { %v2519_v47 = vpop.f32.mrb[21].mxu0  ;;  %v2575_v50 = vpop.f32.mrb[21].mxu1 }
 0x128   : > { %v3684_v49 = vadd.f32 %v2519_v47, %v2518_v45  ;;  %v2521_v26 = vpop.f32.mrb[22].mxu0  ;;  %v2576_v51 = vadd.f32 %v2575_v50, %v2574_v48  ;;  %v2577_v32 = vpop.f32.mrb[22].mxu1 }
 0x129   : > { %v2522_v58 = vpop.f32.mrb[23].mxu0  ;;  %v2578_v3 = vpop.f32.mrb[23].mxu1 }
 0x12a   : > { %v3686_v18 = vadd.f32 %v2522_v58, %v2521_v26  ;;  %v2579_v52 = vadd.f32 %v2578_v3, %v2577_v32  ;;  %v3688_v53 = vadd.f32 %v2576_v51, %v2496_v4 }
 0x12c   : > { %v3690_v6 = vadd.f32 %v2579_v52, %v2499_v11 }
 0x12e   : > { %v2524_v55 = vpop.f32.mrb[24].mxu0  ;;  %v2580_v30 = vpop.f32.mrb[24].mxu1 }
 0x12f   : > { %v2525_v56 = vpop.f32.mrb[25].mxu0  ;;  %v2581_v61 = vpop.f32.mrb[25].mxu1 }
 0x130   : > { %v3692_v57 = vadd.f32 %v2525_v56, %v2524_v55  ;;  %v2527_v60 = vpop.f32.mrb[26].mxu0  ;;  %v2582_v33 = vadd.f32 %v2581_v61, %v2580_v30  ;;  %v2583_v63 = vpop.f32.mrb[26].mxu1 }
 0x131   : > { %v2528_v41 = vpop.f32.mrb[27].mxu0  ;;  %v2584_v31 = vpop.f32.mrb[27].mxu1 }
 0x132   : > { %v3694_v62 = vadd.f32 %v2528_v41, %v2527_v60  ;;  %v2585_v46 = vadd.f32 %v2584_v31, %v2583_v63  ;;  %v3696_v0 = vadd.f32 %v2582_v33, %v2502_v15 }
 0x134   : > { %v3698_v5 = vadd.f32 %v2585_v46, %v2505_v27 }
 0x136   : > { %v2530_v28 = vpop.f32.mrb[28].mxu0  ;;  %v2586_v8 = vpop.f32.mrb[28].mxu1 }
 0x137   : > { %v2531_v1 = vpop.f32.mrb[29].mxu0  ;;  %v2587_v4 = vpop.f32.mrb[29].mxu1 }
 0x138   : > { %v3700_v7 = vadd.f32 %v2531_v1, %v2530_v28  ;;  %v2533_v2 = vpop.f32.mrb[30].mxu0  ;;  %v2588_v54 = vadd.f32 %v2587_v4, %v2586_v8  ;;  %v2589_v11 = vpop.f32.mrb[30].mxu1 }
 0x139   : > { %v2534_v9 = vpop.f32.mrb[31].mxu0  ;;  %v2590_v59 = vpop.f32.mrb[31].mxu1 }
 0x13a   : > { %v3702_v10 = vadd.f32 %v2534_v9, %v2533_v2  ;;  %v2591_v14 = vadd.f32 %v2590_v59, %v2589_v11  ;;  %v3704_v24 = vadd.f32 %v2588_v54, %v2508_v19 }
 0x13c   : > { %v3706_v16 = vadd.f32 %v2591_v14, %v2511_v22 }
 0x13e   : > { %v2648_v15 = vpop.f32.mrb[32].mxu0  ;;  %v2592_v20 = vpop.f32.mrb[32].mxu1 }
 0x13f   : > { %v2649_v12 = vpop.f32.mrb[33].mxu0  ;;  %v2593_v13 = vpop.f32.mrb[33].mxu1 }
 0x140   : > { %v3708_v27 = vadd.f32 %v2649_v12, %v2648_v15  ;;  %v2651_v17 = vpop.f32.mrb[34].mxu0  ;;  %v2594_v36 = vadd.f32 %v2593_v13, %v2592_v20  ;;  %v2595_v23 = vpop.f32.mrb[34].mxu1  ;;  %v1847_v15 = vlaneseq }
 0x141   : > { %v2652_v21 = vpop.f32.mrb[35].mxu0  ;;  %v2596_v37 = vpop.f32.mrb[35].mxu1 }
 0x142   : > { %v3710_v25 = vadd.f32 %v2652_v21, %v2651_v17  ;;  %v2859_v34 = vadd.f32 %v2594_v36, %v3676_v29  ;;  %v2597_v43 = vadd.f32 %v2596_v37, %v2595_v23  ;;  %v1848_v13 = vshrl.u32 %v1847_v15, 7 }
 0x144   : > { %v2865_v44 = vadd.f32 %v2597_v43, %v3678_v40 }
 0x146   : > { %v2654_v19 = vpop.f32.mrb[36].mxu0  ;;  %v2598_v45 = vpop.f32.mrb[36].mxu1 }
 0x147   : > { %v2655_v35 = vpop.f32.mrb[37].mxu0  ;;  %v2599_v26 = vpop.f32.mrb[37].mxu1 }
 0x148   : > { %v2656_v22 = vadd.f32 %v2655_v35, %v2654_v19  ;;  %v2657_v42 = vpop.f32.mrb[38].mxu0  ;;  %v2600_v58 = vadd.f32 %v2599_v26, %v2598_v45  ;;  %v2601_v50 = vpop.f32.mrb[38].mxu1  ;;  %v3737_v19 = vstv %s3137_s29 }
 0x149   : > { %v2658_v47 = vpop.f32.mrb[39].mxu0  ;;  %v2602_v51 = vpop.f32.mrb[39].mxu1  ;;  %vm1861_vm14 = vcmp.lt.s32.totalorder %v3737_v19, 18 }
 0x14a   : > { %v2659_v48 = vadd.f32 %v2658_v47, %v2657_v42  ;;  %v3715_v32 = vadd.f32 %v2600_v58, %v3684_v49  ;;  %v2603_v3 = vadd.f32 %v2602_v51, %v2601_v50  ;;  %v3743_v58 = vadd.s32 8, %v1848_v13  ;;  %vm3828_vm4 = vmpackc.low %vm1861_vm14, %vm1861_vm14 }
 0x14c   : > { %v3718_v29 = vadd.f32 %v2603_v3, %v3686_v18  ;;  %v1854_v3 = vadd.s32 1, %v3737_v19  ;;  %vm1851_vm8 = vcmp.lt.s32.totalorder %v3743_v58, 12 }
 0x14d   : > { %vm3815_vm1 = vmand %vm1851_vm8, %vm1861_vm14 }
 0x14e   : > { %v2660_v52 = vpop.f32.mrb[40].mxu0  ;;  %v2604_v60 = vpop.f32.mrb[40].mxu1  ;;  %vm1862_vm9 = vcmp.lt.s32.totalorder %v1854_v3, 18  ;;  %vm1938_vm5 = vmpackc.low %vm3815_vm1, %vm3815_vm1 }
 0x14f   : > { %v2661_v55 = vpop.f32.mrb[41].mxu0  ;;  %v2605_v41 = vpop.f32.mrb[41].mxu1  ;;  %vm3770_vm10 = vmand %vm1851_vm8, %vm1862_vm9 }
 0x150   : > { %v3720_v40 = vadd.f32 %v2661_v55, %v2660_v52  ;;  %v2663_v56 = vpop.f32.mrb[42].mxu0  ;;  %v2606_v33 = vadd.f32 %v2605_v41, %v2604_v60  ;;  %v2607_v63 = vpop.f32.mrb[42].mxu1  ;;  %vm3783_vm12 = vmpackc.low %vm1862_vm9, %vm1862_vm9 }
 0x151   : > { %v2664_v30 = vpop.f32.mrb[43].mxu0  ;;  %v2608_v31 = vpop.f32.mrb[43].mxu1  ;;  %vm1940_vm13 = vmpackc.low %vm3770_vm10, %vm3770_vm10 }
 0x152   : > { %v3722_v61 = vadd.f32 %v2664_v30, %v2663_v56  ;;  %v3725_v49 = vadd.f32 %v2606_v33, %v3692_v57  ;;  %v2609_v46 = vadd.f32 %v2608_v31, %v2607_v63 }
 0x154   : > { %v3728_v18 = vadd.f32 %v2609_v46, %v3694_v62 }
 0x156   : > { %v2666_v28 = vpop.f32.mrb[44].mxu0  ;;  %v2610_v9 = vpop.f32.mrb[44].mxu1 }
 0x157   : > { %v2667_v1 = vpop.f32.mrb[45].mxu0  ;;  %v2611_v54 = vpop.f32.mrb[45].mxu1 }
 0x158   : > { %v2668_v2 = vadd.f32 %v2667_v1, %v2666_v28  ;;  %v2669_v8 = vpop.f32.mrb[46].mxu0  ;;  %v2612_v59 = vadd.f32 %v2611_v54, %v2610_v9  ;;  %v2613_v14 = vpop.f32.mrb[46].mxu1 }
 0x159   : > { %v2670_v4 = vpop.f32.mrb[47].mxu0  ;;  %v2614_v12 = vpop.f32.mrb[47].mxu1 }
 0x15a   : > { %v2671_v11 = vadd.f32 %v2670_v4, %v2669_v8  ;;  %v3731_v57 = vadd.f32 %v2612_v59, %v3700_v7  ;;  %v2615_v17 = vadd.f32 %v2614_v12, %v2613_v14  ;;  %v1856_v14 = vadd.s32 3, %v3737_v19 }
 0x15c   : > { %v3734_v62 = vadd.f32 %v2615_v17, %v3702_v10  ;;  %vm1864_vm6 = vcmp.lt.s32.totalorder %v1856_v14, 18 }
 0x15e   : > { %v2672_v20 = vpop.f32.mrb[48].mxu0  ;;  %v2762_v37 = vpop.f32.mrb[0].mxu1 }
 0x15f   : > { %v2673_v21 = vpop.f32.mrb[49].mxu0  ;;  %v2825_v35 = vadd.f32 %v3688_v53, %v2762_v37  ;;  %v1334_v42 = vpop.f32.mrb[1].mxu1 }
 0x160   : > { %v2674_v36 = vadd.f32 %v2673_v21, %v2672_v20  ;;  %v2675_v23 = vpop.f32.mrb[50].mxu0  ;;  %v2829_v7 = vadd.f32 %v3680_v38, %v1334_v42  ;;  %v2763_v26 = vpop.f32.mrb[2].mxu1  ;;  %v1860_v20 = vadd.s32 7, %v3737_v19  ;;  %v3065_v42 = vmov 0  }
 0x161   : > { %v2676_v43 = vpop.f32.mrb[51].mxu0  ;;  %v2833_v10 = vadd.f32 %v3690_v6, %v2763_v26  ;;  %v1337_v50 = vpop.f32.mrb[3].mxu1  ;;  %v3746_v51 = vadd.f32 %v2825_v35, %v2656_v22  ;;  %v1956_v26 = vsel %vm1940_vm13, 65537, %v3065_v42  ;;  %v1954_v3 = vsel %vm1938_vm5, 65537, %v3065_v42 }
 0x162   : > { %v2677_v45 = vadd.f32 %v2676_v43, %v2675_v23  ;;  %v3740_v47 = vadd.f32 %v2859_v34, %v2674_v36  ;;  %v2837_v53 = vadd.f32 %v3682_v39, %v1337_v50  ;;  %v3753_v55 = vadd.f32 %v2829_v7, %v3708_v27 }
 0x163   : > { %v3755_v56 = vadd.f32 %v2833_v10, %v2659_v48  ;;  %v1855_v23 = vadd.s32 2, %v3737_v19  ;;  %v1953_v50 = vsel %vm3828_vm4, 65537, %v3065_v42 }
 0x164   : > { %v3749_v52 = vadd.f32 %v2865_v44, %v2677_v45  ;;  %v3758_v60 = vadd.f32 %v2837_v53, %v3710_v25  ;;  %v1858_v44 = vadd.s32 5, %v3737_v19  ;;  %v1955_v45 = vsel %vm3783_vm12, 65537, %v3065_v42  ;;  %vm3883_vm12 = vmpackc.low %vm1864_vm6, %vm1864_vm6 }
 0x165   : > { %vm1863_vm13 = vcmp.lt.s32.totalorder %v1855_v23, 18 }
 0x166   : > { %v2678_v34 = vpop.f32.mrb[52].mxu0  ;;  %v2766_v22 = vpop.f32.mrb[4].mxu1  ;;  %vm1866_vm11 = vcmp.lt.s32.totalorder %v1858_v44, 18  ;;  %vm3923_vm1 = vmand %vm1851_vm8, %vm1863_vm13 }
 0x167   : > { %v2679_v38 = vpop.f32.mrb[53].mxu0  ;;  %v2841_v39 = vadd.f32 %v3704_v24, %v2766_v22  ;;  %v1350_v27 = vpop.f32.mrb[5].mxu1  ;;  %vm3799_vm15 = vmand %vm1851_vm8, %vm1866_vm11 }
 0x168   : > { %v2680_v6 = vadd.f32 %v2679_v38, %v2678_v34  ;;  %v2681_v30 = vpop.f32.mrb[54].mxu0  ;;  %v2845_v63 = vadd.f32 %v3696_v0, %v1350_v27  ;;  %v2767_v25 = vpop.f32.mrb[6].mxu1  ;;  %vm3806_vm0 = vmpackc.low %vm1866_vm11, %vm1866_vm11 }
 0x169   : > { %v2682_v41 = vpop.f32.mrb[55].mxu0  ;;  %v2849_v46 = vadd.f32 %v3706_v16, %v2767_v25  ;;  %v1353_v28 = vpop.f32.mrb[7].mxu1  ;;  %v3778_v1 = vadd.f32 %v2841_v39, %v2668_v2  ;;  %v1857_v16 = vadd.s32 4, %v3737_v19  ;;  %vm1948_vm2 = vmpackc.low %vm3799_vm15, %vm3799_vm15  ;;  %v1963_v10 = vsel %vm3806_vm0, 65537, %v3065_v42 }
 0x16a   : > { %v2683_v33 = vadd.f32 %v2682_v41, %v2681_v30  ;;  %v3764_v48 = vadd.f32 %v3715_v32, %v2680_v6  ;;  %v2853_v32 = vadd.f32 %v3698_v5, %v1353_v28  ;;  %v3788_v8 = vadd.f32 %v2845_v63, %v3720_v40  ;;  %vm3853_vm11 = vmand %vm1851_vm8, %vm1864_vm6 }
 0x16b   : > { %vm1865_vm3 = vcmp.lt.s32.totalorder %v1857_v16, 18  ;;  %v1964_v38 = vsel %vm1948_vm2, 65537, %v3065_v42  ;;  %vm1944_vm10 = vmpackc.low %vm3853_vm11, %vm3853_vm11  ;;  %v2438_v41 = vcombine.low %v1953_v50, %v1954_v3 }
 0x16c   : > { %v3776_v24 = vadd.f32 %v3718_v29, %v2683_v33  ;;  %v3795_v29 = vadd.f32 %v2849_v46, %v2671_v11  ;;  %v3804_v40 = vadd.f32 %v2853_v32, %v3722_v61  ;;  %vm3841_vm7 = vmand %vm1851_vm8, %vm1865_vm3  ;;  %v1859_v33 = vadd.s32 6, %v3737_v19 }
 0x16d   : > { %vm3845_vm9 = vmpackc.low %vm1865_vm3, %vm1865_vm3  ;;  %vm1868_vm3 = vcmp.lt.s32.totalorder %v1860_v20, 18  ;;  %v2443_v63 = vcombine.low %v1963_v10, %v1964_v38  ;;  %v3939_v32 = vsel %vm3883_vm12, 65537, %v3065_v42  ;;  %v3947_v0 = vsel %vm1944_vm10, 65537, %v3065_v42 }
 0x16e   : > { %v2684_v9 = vpop.f32.mrb[56].mxu0  ;;  %vm1946_vm14 = vmpackc.low %vm3841_vm7, %vm3841_vm7  ;;  %v1961_v30 = vsel %vm3845_vm9, 65537, %v3065_v42  ;;  %vm3960_vm6 = vcmp.ne.s16.totalorder %v2438_v41, 0  ;;  %vm1867_vm9 = vcmp.lt.s32.totalorder %v1859_v33, 18 }
 0x16f   : > { %v2685_v5 = vpop.f32.mrb[57].mxu0  ;;  %v1962_v44 = vsel %vm1946_vm14, 65537, %v3065_v42  ;;  %vm3906_vm0 = vmand %vm1851_vm8, %vm1868_vm3  ;;  %vm3969_vm11 = vcmp.ne.s16.totalorder %v2443_v63, 0 }
 0x170   : > { %v2686_v4 = vadd.f32 %v2685_v5, %v2684_v9  ;;  %v2687_v54 = vpop.f32.mrb[58].mxu0  ;;  %vm3915_vm15 = vmpackc.low %vm1868_vm3, %vm1868_vm3  ;;  %v2442_v46 = vcombine.low %v1961_v30, %v1962_v44 }
 0x171   : > { %v2688_v11 = vpop.f32.mrb[59].mxu0  ;;  %vm1952_vm2 = vmpackc.low %vm3906_vm0, %vm3906_vm0 }
 0x172   : > { %v2689_v12 = vadd.f32 %v2688_v11, %v2687_v54  ;;  %v3823_v61 = vadd.f32 %v3725_v49, %v2686_v4  ;;  %vm3951_vm4 = vmpackc.low %vm1863_vm13, %vm1863_vm13  ;;  %v3976_v11 = vsel %vm3915_vm15, 65537, %v3065_v42  ;;  %v3984_v15 = vsel %vm1952_vm2, 65537, %v3065_v42 }
 0x173   : > { %vm1942_vm7 = vmpackc.low %vm3923_vm1, %vm3923_vm1  ;;  %vm3989_vm14 = vcmp.ne.s16.totalorder %v2442_v46, 0 }
 0x174   : > { %v3837_v21 = vadd.f32 %v3728_v18, %v2689_v12  ;;  %vm4023_vm3 = vmand %vm1851_vm8, %vm1867_vm9 }
 0x175   : > { %vm4032_vm12 = vmpackc.low %vm1867_vm9, %vm1867_vm9 }
 0x176   : > { %v2690_v13 = vpop.f32.mrb[60].mxu0  ;;  %vm1950_vm8 = vmpackc.low %vm4023_vm3, %vm4023_vm3 }
 0x177   : > { %v2691_v37 = vpop.f32.mrb[61].mxu0 }
 0x178   : > { %v2692_v43 = vadd.f32 %v2691_v37, %v2690_v13  ;;  %v2693_v35 = vpop.f32.mrb[62].mxu0  ;;  %v2441_v13 = vcombine.low %v3939_v32, %v3947_v0 }
 0x179   : > { %v2694_v7 = vpop.f32.mrb[63].mxu0 }
 0x17a   : > { %v2695_v34 = vadd.f32 %v2694_v7, %v2693_v35  ;;  %v3894_v6 = vadd.f32 %v3731_v57, %v2692_v43  ;;  %v2439_v57 = vcombine.low %v1955_v45, %v1956_v26  ;;  %v2445_v45 = vcombine.low %v3976_v11, %v3984_v15 }
 0x17b   : > { %vm1996_vm10 = vcmp.ne.s16.totalorder %v2441_v13, 0 }
 0x17c   : > { %v3911_v39 = vadd.f32 %v3734_v62, %v2695_v34  ;;  %v3930_v62 = vld [vmem:[%s4133_s4] ss:$0 sm:$0xff]  ;;  %vm3956_vm5 = vcmp.ne.s16.totalorder %v2439_v57, 0  ;;  %vm4089_vm13 = vcmp.ne.s16.totalorder %v2445_v45, 0 }
 0x17e   : > { %v2794_v31 = vpop.f32.mrb[64].mxu0  ;;  %v2802_v54 = vpop.f32.mrb[8].mxu1 }
 0x17f   : > { %v2827_v19 = vadd.f32 %v3746_v51, %v2794_v31  ;;  %v1721_v28 = vpop.f32.mrb[65].mxu0  ;;  %v1753_v17 = vpop.f32.mrb[9].mxu1 }
 0x180   : > { %v2831_v51 = vadd.f32 %v3753_v55, %v1721_v28  ;;  %v2795_v16 = vpop.f32.mrb[66].mxu0  ;;  %v2861_v36 = vadd.f32 %v3740_v47, %v1753_v17  ;;  %v2803_v37 = vpop.f32.mrb[10].mxu1 }
 0x181   : > { %v1809_v4 = vadd.f32 %v2827_v19, %v3930_v62  ;;  %v2835_v59 = vadd.f32 %v3755_v56, %v2795_v16  ;;  %v1724_v14 = vpop.f32.mrb[67].mxu0  ;;  %v2858_v56 = vadd.f32 %v3764_v48, %v2802_v54  ;;  %v4000_v48 = vsel %vm3951_vm4, 65537, %v3065_v42  ;;  %v1756_v35 = vpop.f32.mrb[11].mxu1 }
 0x182   : > { %v1807_v12 = vadd.f32 %v2831_v51, %v3930_v62  ;;  %v2839_v20 = vadd.f32 %v3758_v60, %v1724_v14  ;;  %v4008_v60 = vsel %vm1942_vm7, 65537, %v3065_v42  ;;  %v2864_v47 = vadd.f32 %v3776_v24, %v2803_v37 }
 0x183   : > { %v1810_v23 = vadd.f32 %v2835_v59, %v3930_v62  ;;  %v1817_v18 = vadd.f32 %v2858_v56, %v3930_v62  ;;  %v1825_v7 = vmax.f32 %v1809_v4, 0.0  ;;  %v1815_v26 = vadd.f32 %v2861_v36, %v3930_v62 }
 0x184   : > { %v1808_v43 = vadd.f32 %v2839_v20, %v3930_v62  ;;  %v2867_v50 = vadd.f32 %v3749_v52, %v1756_v35  ;;  %v1823_v3 = vmax.f32 %v1807_v12, 0.0  ;;  %v1818_v53 = vadd.f32 %v2864_v47, %v3930_v62 }
 0x185   : > { %v1826_v10 = vmax.f32 %v1810_v23, 0.0  ;;  %v2440_v24 = vcombine.low %v4000_v48, %v4008_v60  ;;  %v1833_v44 = vmax.f32 %v1817_v18, 0.0  ;;  %v1831_v27 = vmax.f32 %v1815_v26, 0.0 }
 0x186   : > { %v1824_v34 = vmax.f32 %v1808_v43, 0.0  ;;  %v2798_v38 = vpop.f32.mrb[68].mxu0  ;;  %v1816_v52 = vadd.f32 %v2867_v50, %v3930_v62  ;;  %v1834_v63 = vmax.f32 %v1818_v53, 0.0  ;;  %v2806_v33 = vpop.f32.mrb[12].mxu1  ;;  %v1966_v23 = vsel %vm1950_vm8, 65537, %v3065_v42 }
 0x187   : > { %v1840_v22 = vpack.c.bf16 %v1826_v10, %v1825_v7  ;;  %v2843_v57 = vadd.f32 %v3778_v1, %v2798_v38  ;;  %v1737_v41 = vpop.f32.mrb[69].mxu0  ;;  %v1769_v54 = vpop.f32.mrb[13].mxu1  ;;  %v2870_v2 = vadd.f32 %v3894_v6, %v2806_v33  ;;  %vm4097_vm0 = vcmp.ne.s16.totalorder %v2440_v24, 0 }
 0x188   : > { %v1839_v25 = vpack.c.bf16 %v1824_v34, %v1823_v3  ;;  %v2847_v31 = vadd.f32 %v3788_v8, %v1737_v41  ;;  %v2799_v46 = vpop.f32.mrb[70].mxu0  ;;  %v1832_v19 = vmax.f32 %v1816_v52, 0.0  ;;  %v1844_v4 = vpack.c.bf16 %v1834_v63, %v1833_v44  ;;  %v2807_v12 = vpop.f32.mrb[14].mxu1 }
 0x189   : > { %v2002_v1 = vsel %vm3956_vm5, %v1840_v22, 0  ;;  %v1813_v8 = vadd.f32 %v2843_v57, %v3930_v62  ;;  %v2851_v28 = vadd.f32 %v3795_v29, %v2799_v46  ;;  %v1740_v9 = vpop.f32.mrb[71].mxu0  ;;  %v1965_v29 = vsel %vm4032_vm12, 65537, %v3065_v42  ;;  %v1772_v36 = vpop.f32.mrb[15].mxu1 }
 0x18a   : > { %v2448_v51 = vcombine.low %v2002_v1, %v2002_v1  ;;  %v2449_v16 = vcombine.high %v2002_v1, %v2002_v1  ;;  %v2001_v5 = vsel %vm3960_vm6, %v1839_v25, 0  ;;  %v1843_v56 = vpack.c.bf16 %v1832_v19, %v1831_v27 }
 0x18b   : > { %v2446_v59 = vcombine.low %v2001_v5, %v2001_v5  ;;  %v2447_v14 = vcombine.high %v2001_v5, %v2001_v5  ;;  %v2006_v17 = vsel %vm3969_vm11, %v1844_v4, 0  ;;  %v2873_v20 = vadd.f32 %v3823_v61, %v1769_v54 }
 0x18c   : > { %2067 = vst [vmem:[%s4041_s13 + $0x8] sm:$0xf] %v2448_v51  ;;  %2068 = vst [vmem:[%s4041_s13 + $0xc] sm:$0xf] %v2449_v16  ;;  %v2456_v37 = vcombine.low %v2006_v17, %v2006_v17  ;;  %v2457_v18 = vcombine.high %v2006_v17, %v2006_v17  ;;  %v2005_v55 = vsel %vm3989_vm14, %v1843_v56, 0  ;;  %v1814_v6 = vadd.f32 %v2851_v28, %v3930_v62 }
 0x18d   : > { %2065 = vst [vmem:[%s4041_s13] sm:$0xf] %v2446_v59  ;;  %2066 = vst [vmem:[%s4041_s13 + $0x4] sm:$0xf] %v2447_v14  ;;  %v2454_v61 = vcombine.low %v2005_v55, %v2005_v55  ;;  %v2455_v47 = vcombine.high %v2005_v55, %v2005_v55  ;;  %v1829_v43 = vmax.f32 %v1813_v8, 0.0  ;;  %v1811_v35 = vadd.f32 %v2847_v31, %v3930_v62 }
 0x18e   : > { %2075 = vst [vmem:[%s4041_s13 + $0x28] sm:$0xf] %v2456_v37  ;;  %2076 = vst [vmem:[%s4041_s13 + $0x2c] sm:$0xf] %v2457_v18  ;;  %v1821_v42 = vadd.f32 %v2870_v2, %v3930_v62  ;;  %v1830_v7 = vmax.f32 %v1814_v6, 0.0  ;;  %v2876_v26 = vadd.f32 %v3911_v39, %v2807_v12  ;;  %v2855_v10 = vadd.f32 %v3804_v40, %v1740_v9 }
 0x18f   : > { %2073 = vst [vmem:[%s4041_s13 + $0x20] sm:$0xf] %v2454_v61  ;;  %2074 = vst [vmem:[%s4041_s13 + $0x24] sm:$0xf] %v2455_v47  ;;  %v1819_v49 = vadd.f32 %v2873_v20, %v3930_v62  ;;  %v2879_v50 = vadd.f32 %v3837_v21, %v1772_v36  ;;  %v1827_v34 = vmax.f32 %v1811_v35, 0.0  ;;  %v2444_v0 = vcombine.low %v1965_v29, %v1966_v23 }
 0x190   : > { %v1842_v3 = vpack.c.bf16 %v1830_v7, %v1829_v43  ;;  %v1822_v53 = vadd.f32 %v2876_v26, %v3930_v62  ;;  %v1812_v40 = vadd.f32 %v2855_v10, %v3930_v62  ;;  %v1837_v11 = vmax.f32 %v1821_v42, 0.0 }
 0x191   : > { %v1820_v32 = vadd.f32 %v2879_v50, %v3930_v62  ;;  %v1835_v38 = vmax.f32 %v1819_v49, 0.0  ;;  %vm1999_vm15 = vcmp.ne.s16.totalorder %v2444_v0, 0 }
 0x192   : > { %v2004_v15 = vsel %vm1996_vm10, %v1842_v3, 0  ;;  %v1838_v13 = vmax.f32 %v1822_v53, 0.0  ;;  %v1828_v45 = vmax.f32 %v1812_v40, 0.0 }
 0x193   : > { %v2452_v30 = vcombine.low %v2004_v15, %v2004_v15  ;;  %v2453_v44 = vcombine.high %v2004_v15, %v2004_v15  ;;  %v1836_v22 = vmax.f32 %v1820_v32, 0.0 }
 0x194   : > { %v1846_v52 = vpack.c.bf16 %v1838_v13, %v1837_v11  ;;  %v1841_v48 = vpack.c.bf16 %v1828_v45, %v1827_v34 }
 0x195   : > { %2071 = vst [vmem:[%s4041_s13 + $0x18] sm:$0xf] %v2452_v30  ;;  %2072 = vst [vmem:[%s4041_s13 + $0x1c] sm:$0xf] %v2453_v44  ;;  %v1845_v60 = vpack.c.bf16 %v1836_v22, %v1835_v38 }
 0x196   : > { %v2008_v62 = vsel %vm4089_vm13, %v1846_v52, 0  ;;  %v2003_v24 = vsel %vm4097_vm0, %v1841_v48, 0 }
 0x197   : > { %v2460_v57 = vcombine.low %v2008_v62, %v2008_v62  ;;  %v2461_v41 = vcombine.high %v2008_v62, %v2008_v62  ;;  %v2450_v27 = vcombine.low %v2003_v24, %v2003_v24  ;;  %v2451_v63 = vcombine.high %v2003_v24, %v2003_v24 }
 0x198   : > { %v2007_v25 = vsel %vm1999_vm15, %v1845_v60, 0 }
 0x199   : > { %2079 = vst [vmem:[%s4041_s13 + $0x38] sm:$0xf] %v2460_v57  ;;  %2080 = vst [vmem:[%s4041_s13 + $0x3c] sm:$0xf] %v2461_v41  ;;  %v2458_v31 = vcombine.low %v2007_v25, %v2007_v25  ;;  %v2459_v46 = vcombine.high %v2007_v25, %v2007_v25 }
 0x19a   : > { %2069 = vst [vmem:[%s4041_s13 + $0x10] sm:$0xf] %v2450_v27  ;;  %2070 = vst [vmem:[%s4041_s13 + $0x14] sm:$0xf] %v2451_v63 }
 0x19b   : > { %2077 = vst [vmem:[%s4041_s13 + $0x30] sm:$0xf] %v2458_v31  ;;  %2078 = vst [vmem:[%s4041_s13 + $0x34] sm:$0xf] %v2459_v46 }
 0x19c PF: > { %s15_s22 = sadd.s32 1, %s3063_s22   ;;  %s4186_s18 = smov %s3055_s20 }
 0x19d   : > { %p12_p12 = scmp.ge.s32.totalorder %s15_s22, 10   ;;  %s4187_s19 = smov %s3059_s21 }
 0x19e   : > { %s4188_s20 = smov %s4191_s23  ;;  %s4189_s21 = smov %s4195_s24 }
 0x19f   :  { %14 = sbr.rel (!%p12_p12) target bundleno = 3 (0x3), region = 78 }

</bundles_post_ra>
